<compile_context>
chip_gen: v6e
topology: v6e:2x2x1
jax: 0.10.0
libtpu: 0.0.40
codegen_flags: <defaults>
</compile_context>

<pallas_src>
import math
import jax
import jax.numpy as jnp
from jax import lax
from jax.experimental import pallas as pl
from jax.experimental.pallas import tpu as pltpu

ACCOUNT_DIM = 16
HIDDEN_DIM = 32
H2 = HIDDEN_DIM // 2

# "NT" matmul: contract the minor dims of both operands -> (lhs_free, rhs_free).
_NT_DIMS = (((1,), (1,)), ((), ()))

# Abramowitz & Stegun 7.1.26 erf coefficients (max |erf error| = 1.5e-7).
_AS_P = 0.3275911
_AS_A1 = 0.254829592
_AS_A2 = -0.284496736
_AS_A3 = 1.421413741
_AS_A4 = -1.453152027
_AS_A5 = 1.061405429
_INV_SQRT2 = 1.0 / math.sqrt(2.0)


def _round_up(x, m):
    return (x + m - 1) // m * m


def _gelu_erf(x):
    """GELU(x) = 0.5*x*(1 + erf(x/sqrt(2))) with a hand-rolled erf.

    erf uses A&S 7.1.26 so exp(-x^2/2) (and the divide's reciprocal seed) land on
    the EUP slot instead of lengthening the VALU polynomial that binds this kernel.
    Max per-activation deviation from exact erf is 1.5e-7 -> ~1e-5-level differences
    on the network output (well inside the test tolerance below).
    """
    ax = jnp.abs(x) * _INV_SQRT2                      # |x| / sqrt(2)
    t = 1.0 / (1.0 + _AS_P * ax)
    poly = t * (_AS_A1 + t * (_AS_A2 + t * (_AS_A3 + t * (_AS_A4 + t * _AS_A5))))
    pe = poly * jnp.exp(-(ax * ax))                   # = 1 - erf(|x|/sqrt(2)); exp -> EUP
    # 1 + erf(x/sqrt(2)) = 2 - pe  (x >= 0)   |   pe  (x < 0)
    one_plus_erf = jnp.where(x >= 0.0, 2.0 - pe, pe)
    return 0.5 * x * one_plus_erf


def followpred_kernel(
    f_ref,     # (TB, A)  follower features, batch-major (as stored in HBM)
    t_ref,     # (TB, A)  target features
    wfe_ref,   # (H, A)
    bfe_ref,   # (H, 1)
    wte_ref,   # (H, A)
    bte_ref,   # (H, 1)
    w1a_ref,   # (H, H)   W1^T block acting on fe
    w1b_ref,   # (H, H)   W1^T block acting on te
    w1c_ref,   # (H, H)   W1^T block acting on fe*te
    b1_ref,    # (H, 1)
    w2_ref,    # (H2, H)
    b2_ref,    # (H2, 1)
    w3_ref,    # (1, H2)
    b3_ref,    # (1,)  scalar in SMEM
    out_ref,   # (1, TB)  lane-dense output row
):
    f32 = jnp.float32
    f = f_ref[...].astype(f32)
    t = t_ref[...].astype(f32)

    # Encoders: contract the minor (feature) dims so the result is feature-major
    # (H, TB): the batch stays on the 128-wide lane axis, every downstream matmul,
    # GELU and the final store are lane-dense, and no host transpose is needed.
    fe = _gelu_erf(
        lax.dot_general(wfe_ref[...], f, _NT_DIMS, preferred_element_type=f32)
        + bfe_ref[...]
    )
    te = _gelu_erf(
        lax.dot_general(wte_ref[...], t, _NT_DIMS, preferred_element_type=f32)
        + bte_ref[...]
    )
    prod = fe * te

    # concat([fe, te, fe*te]) @ W1^T  ==  W1a@fe + W1b@te + W1c@prod  (no relayout;
    # MXU has huge slack at these sizes, so three small dots are effectively free).
    h1 = _gelu_erf(
        jnp.dot(w1a_ref[...], fe, preferred_element_type=f32)
        + jnp.dot(w1b_ref[...], te, preferred_element_type=f32)
        + jnp.dot(w1c_ref[...], prod, preferred_element_type=f32)
        + b1_ref[...]
    )
    h2 = _gelu_erf(
        jnp.dot(w2_ref[...], h1, preferred_element_type=f32) + b2_ref[...]
    )

    # Final out_features=1 projection: (1, H2) @ (H2, TB) -> lane-dense (1, TB) row.
    y = jnp.dot(w3_ref[...], h2, preferred_element_type=f32) + b3_ref[0]
    out_ref[...] = y.astype(out_ref.dtype)


def pack_params(params):
    """One-time repack of (in, out)-stored Linear params into the kernel layout."""
    (wfe, bfe, wte, bte, w1, b1, w2, b2, w3, b3) = params
    H = HIDDEN_DIM
    f32 = jnp.float32
    return dict(
        wfe=wfe.T.astype(f32),                 # (H, A)
        bfe=bfe.reshape(H, 1).astype(f32),
        wte=wte.T.astype(f32),                 # (H, A)
        bte=bte.reshape(H, 1).astype(f32),
        w1a=w1[:H, :].T.astype(f32),           # (H, H)  acts on fe
        w1b=w1[H:2 * H, :].T.astype(f32),      # (H, H)  acts on te
        w1c=w1[2 * H:, :].T.astype(f32),       # (H, H)  acts on fe*te
        b1=b1.reshape(H, 1).astype(f32),
        w2=w2.T.astype(f32),                   # (H2, H)
        b2=b2.reshape(H2, 1).astype(f32),
        w3=w3.reshape(1, H2).astype(f32),      # (1, H2)
        b3=b3.reshape(1).astype(f32),          # SMEM scalar
    )


def followpred_forward(f, t, packed, *, tile_b=8192):
    B, A = f.shape
    assert t.shape == (B, A) and A == ACCOUNT_DIM
    H = HIDDEN_DIM

    # Lane-dense tile (multiple of 128), capped at ceil(B/2) so the grid has >= 2
    # "parallel" steps whenever the batch allows it (feeds both v7x TensorCores).
    tile_b = max(128, _round_up(tile_b, 128))
    half = _round_up(-(-B // 2), 128)
    tb = max(128, min(tile_b, half))
    G = -(-B // tb)
    Bp = G * tb

    # Ragged last tile only: cheap zero-pad of the small (B, A) inputs.  (No
    # transpose / concat / full feature-major slab relayout like the old version.)
    if Bp != B:
        f = jnp.pad(f, ((0, Bp - B), (0, 0)))
        t = jnp.pad(t, ((0, Bp - B), (0, 0)))

    act_spec = pl.BlockSpec((tb, A), lambda i: (i, 0))
    wspec = lambda shape: pl.BlockSpec(shape, lambda i: (0, 0))  # VMEM-resident

    # Live VMEM ~= two double-buffered (tb, A) tiles (lane-padded to 128) plus the
    # feature-major temporaries; add generous headroom, stay under v7x's 64 MiB.
    vmem_limit = min(56 * 1024 * 1024, 2048 * tb + 24 * 1024 * 1024)

    out = pl.pallas_call(
        followpred_kernel,
        out_shape=jax.ShapeDtypeStruct((1, Bp), jnp.float32),
        grid_spec=pltpu.PrefetchScalarGridSpec(
            num_scalar_prefetch=0,
            grid=(G,),
            in_specs=[
                act_spec,                                   # f tile
                act_spec,                                   # t tile
                wspec((H, A)), wspec((H, 1)),               # fe encoder
                wspec((H, A)), wspec((H, 1)),               # te encoder
                wspec((H, H)), wspec((H, H)), wspec((H, H)), wspec((H, 1)),  # W1 + b1
                wspec((H2, H)), wspec((H2, 1)),             # W2, b2
                wspec((1, H2)),                             # W3 row
                pl.BlockSpec(memory_space=pltpu.MemorySpace.SMEM),           # b3 scalar
            ],
            out_specs=pl.BlockSpec((1, tb), lambda i: (0, i)),
        ),
        compiler_params=pltpu.CompilerParams(
            dimension_semantics=("parallel",),
            vmem_limit_bytes=vmem_limit,
        ),
    )(
        f, t,
        packed["wfe"], packed["bfe"], packed["wte"], packed["bte"],
        packed["w1a"], packed["w1b"], packed["w1c"], packed["b1"],
        packed["w2"], packed["b2"], packed["w3"], packed["b3"],
    )
    return out[0, :B]  # squeeze(-1) + drop batch padding


def init_params(key):
    """Deterministic synthetic parameters. Weights stored (in, out)."""
    H = HIDDEN_DIM
    ks = jax.random.split(key, 10)

    def lin(kw, kb, fan_in, fan_out):
        bound = 1.0 / math.sqrt(fan_in)
        w = jax.random.uniform(kw, (fan_in, fan_out), jnp.float32, -bound, bound)
        b = jax.random.uniform(kb, (fan_out,), jnp.float32, -bound, bound)
        return w, b

    wfe, bfe = lin(ks[0], ks[1], ACCOUNT_DIM, H)
    wte, bte = lin(ks[2], ks[3], ACCOUNT_DIM, H)
    w1, b1 = lin(ks[4], ks[5], 3 * H, H)
    w2, b2 = lin(ks[6], ks[7], H, H2)
    w3, b3 = lin(ks[8], ks[9], H2, 1)
    return (wfe, bfe, wte, bte, w1, b1, w2, b2, w3, b3)


def reference_forward(f, t, params):
    (wfe, bfe, wte, bte, w1, b1, w2, b2, w3, b3) = params
    g = lambda x: jax.nn.gelu(x, approximate=False)   # exact-erf GELU
    fe = g(f @ wfe + bfe)
    te = g(t @ wte + bte)
    x = jnp.concatenate([fe, te, fe * te], axis=-1)
    h1 = g(x @ w1 + b1)
    h2 = g(h1 @ w2 + b2)
    return (h2 @ w3 + b3)[:, 0]


if __name__ == "__main__":
    key = jax.random.PRNGKey(0)
    kp, kf, kt = jax.random.split(key, 3)

    params = init_params(kp)
    packed = pack_params(params)   # one-time weight repack (not in the per-call path)

    # Aligned batch: two lane-dense tiles of 128 (exercises the multi-tile grid).
    B = 256
    f = jax.random.normal(kf, (B, ACCOUNT_DIM), jnp.float32)
    t = jax.random.normal(kt, (B, ACCOUNT_DIM), jnp.float32)

    out = jax.block_until_ready(followpred_forward(f, t, packed))
    ref = reference_forward(f, t, params)
    assert out.shape == (B,)
    # A&S erf carries a <=1.5e-7 per-activation approximation; observed end-to-end
    # deviation is ~1e-5, so 1e-4 gives comfortable margin while staying faithful.
    assert jnp.allclose(out, ref, atol=1e-4, rtol=1e-4), "mismatch vs reference (B=256)"

    # Ragged batch: exercises the cheap tail-pad path.
    B2 = 37
    out2 = jax.block_until_ready(followpred_forward(f[:B2], t[:B2], packed))
    assert out2.shape == (B2,)
    assert jnp.allclose(out2, ref[:B2], atol=1e-4, rtol=1e-4), "mismatch vs reference (B=37)"

    print("KERNEL_OK")
</pallas_src>

<mosaic_0001>
module attributes {stable_mosaic.version = 11 : i64} {
  func.func @followpred_kernel(%arg0: i32, %arg1: memref<128x16xf32, #tpu.memory_space<vmem>>, %arg2: memref<128x16xf32, #tpu.memory_space<vmem>>, %arg3: memref<32x16xf32, #tpu.memory_space<vmem>>, %arg4: memref<32x1xf32, #tpu.memory_space<vmem>>, %arg5: memref<32x16xf32, #tpu.memory_space<vmem>>, %arg6: memref<32x1xf32, #tpu.memory_space<vmem>>, %arg7: memref<32x32xf32, #tpu.memory_space<vmem>>, %arg8: memref<32x32xf32, #tpu.memory_space<vmem>>, %arg9: memref<32x32xf32, #tpu.memory_space<vmem>>, %arg10: memref<32x1xf32, #tpu.memory_space<vmem>>, %arg11: memref<16x32xf32, #tpu.memory_space<vmem>>, %arg12: memref<16x1xf32, #tpu.memory_space<vmem>>, %arg13: memref<1x16xf32, #tpu.memory_space<vmem>>, %arg14: memref<1xf32, #tpu.memory_space<smem>>, %arg15: memref<1x128xf32, #tpu.memory_space<vmem>>) attributes {dimension_semantics = [#tpu.dimension_semantics<parallel>], iteration_bounds = array<i64: 2>, scalar_prefetch = 0 : i64, scratch_operands = 0 : i64, tpu.core_type = #tpu.core_type<tc>, window_params = [{transform_indices = @transform_0, window_bounds = array<i64: 128, 16>}, {transform_indices = @transform_1, window_bounds = array<i64: 128, 16>}, {pipeline_mode = #tpu.pipeline_mode<synchronous>, transform_indices = @transform_2, window_bounds = array<i64: 32, 16>}, {pipeline_mode = #tpu.pipeline_mode<synchronous>, transform_indices = @transform_3, window_bounds = array<i64: 32, 1>}, {pipeline_mode = #tpu.pipeline_mode<synchronous>, transform_indices = @transform_4, window_bounds = array<i64: 32, 16>}, {pipeline_mode = #tpu.pipeline_mode<synchronous>, transform_indices = @transform_5, window_bounds = array<i64: 32, 1>}, {pipeline_mode = #tpu.pipeline_mode<synchronous>, transform_indices = @transform_6, window_bounds = array<i64: 32, 32>}, {pipeline_mode = #tpu.pipeline_mode<synchronous>, transform_indices = @transform_7, window_bounds = array<i64: 32, 32>}, {pipeline_mode = #tpu.pipeline_mode<synchronous>, transform_indices = @transform_8, window_bounds = array<i64: 32, 32>}, {pipeline_mode = #tpu.pipeline_mode<synchronous>, transform_indices = @transform_9, window_bounds = array<i64: 32, 1>}, {pipeline_mode = #tpu.pipeline_mode<synchronous>, transform_indices = @transform_10, window_bounds = array<i64: 16, 32>}, {pipeline_mode = #tpu.pipeline_mode<synchronous>, transform_indices = @transform_11, window_bounds = array<i64: 16, 1>}, {pipeline_mode = #tpu.pipeline_mode<synchronous>, transform_indices = @transform_12, window_bounds = array<i64: 1, 16>}, {transform_indices = @transform_13, window_bounds = array<i64: 1>}, {transform_indices = @transform_14, window_bounds = array<i64: 1, 128>}]} {
    %c0 = arith.constant 0 : index
    %c0_0 = arith.constant 0 : index
    %0 = vector.load %arg1[%c0, %c0_0] : memref<128x16xf32, #tpu.memory_space<vmem>>, vector<128x16xf32>
    %c0_1 = arith.constant 0 : index
    %c0_2 = arith.constant 0 : index
    %1 = vector.load %arg2[%c0_1, %c0_2] : memref<128x16xf32, #tpu.memory_space<vmem>>, vector<128x16xf32>
    %c0_3 = arith.constant 0 : index
    %c0_4 = arith.constant 0 : index
    %2 = vector.load %arg3[%c0_3, %c0_4] : memref<32x16xf32, #tpu.memory_space<vmem>>, vector<32x16xf32>
    %cst = arith.constant dense<0.000000e+00> : vector<32x128xf32>
    %3 = tpu.matmul %2, %0, %cst {dimension_numbers = #tpu.dot_dimension_numbers<[1], [1], [0], [0], [0, 0, 1, 0], [], []>} : vector<32x16xf32>, vector<128x16xf32>, vector<32x128xf32> -> vector<32x128xf32>
    %c0_5 = arith.constant 0 : index
    %c0_6 = arith.constant 0 : index
    %4 = vector.load %arg4[%c0_5, %c0_6] : memref<32x1xf32, #tpu.memory_space<vmem>>, vector<32x1xf32>
    %5 = vector.broadcast %4 : vector<32x1xf32> to vector<32x128xf32>
    %6 = arith.addf %3, %5 : vector<32x128xf32>
    %7 = math.absf %6 : vector<32x128xf32>
    %cst_7 = arith.constant 0.707106769 : f32
    %8 = vector.broadcast %cst_7 : f32 to vector<32x128xf32>
    %9 = arith.mulf %7, %8 : vector<32x128xf32>
    %cst_8 = arith.constant 0.327591091 : f32
    %10 = vector.broadcast %cst_8 : f32 to vector<32x128xf32>
    %11 = arith.mulf %10, %9 : vector<32x128xf32>
    %cst_9 = arith.constant 1.000000e+00 : f32
    %12 = vector.broadcast %cst_9 : f32 to vector<32x128xf32>
    %13 = arith.addf %12, %11 : vector<32x128xf32>
    %cst_10 = arith.constant 1.000000e+00 : f32
    %14 = vector.broadcast %cst_10 : f32 to vector<32x128xf32>
    %15 = arith.divf %14, %13 : vector<32x128xf32>
    %cst_11 = arith.constant 1.06140542 : f32
    %16 = vector.broadcast %cst_11 : f32 to vector<32x128xf32>
    %17 = arith.mulf %15, %16 : vector<32x128xf32>
    %cst_12 = arith.constant -1.45315206 : f32
    %18 = vector.broadcast %cst_12 : f32 to vector<32x128xf32>
    %19 = arith.addf %18, %17 : vector<32x128xf32>
    %20 = arith.mulf %15, %19 : vector<32x128xf32>
    %cst_13 = arith.constant 1.42141378 : f32
    %21 = vector.broadcast %cst_13 : f32 to vector<32x128xf32>
    %22 = arith.addf %21, %20 : vector<32x128xf32>
    %23 = arith.mulf %15, %22 : vector<32x128xf32>
    %cst_14 = arith.constant -0.284496725 : f32
    %24 = vector.broadcast %cst_14 : f32 to vector<32x128xf32>
    %25 = arith.addf %24, %23 : vector<32x128xf32>
    %26 = arith.mulf %15, %25 : vector<32x128xf32>
    %cst_15 = arith.constant 0.254829586 : f32
    %27 = vector.broadcast %cst_15 : f32 to vector<32x128xf32>
    %28 = arith.addf %27, %26 : vector<32x128xf32>
    %29 = arith.mulf %15, %28 : vector<32x128xf32>
    %30 = arith.mulf %9, %9 : vector<32x128xf32>
    %cst_16 = arith.constant 0.000000e+00 : f32
    %31 = vector.broadcast %cst_16 : f32 to vector<32x128xf32>
    %32 = arith.subf %31, %30 : vector<32x128xf32>
    %33 = math.exp %32 : vector<32x128xf32>
    %34 = arith.mulf %29, %33 : vector<32x128xf32>
    %cst_17 = arith.constant 0.000000e+00 : f32
    %35 = vector.broadcast %cst_17 : f32 to vector<32x128xf32>
    %36 = arith.cmpf oge, %6, %35 : vector<32x128xf32>
    %cst_18 = arith.constant 2.000000e+00 : f32
    %37 = vector.broadcast %cst_18 : f32 to vector<32x128xf32>
    %38 = arith.subf %37, %34 : vector<32x128xf32>
    %39 = arith.select %36, %38, %34 : vector<32x128xi1>, vector<32x128xf32>
    %cst_19 = arith.constant 5.000000e-01 : f32
    %40 = vector.broadcast %cst_19 : f32 to vector<32x128xf32>
    %41 = arith.mulf %40, %6 : vector<32x128xf32>
    %42 = arith.mulf %41, %39 : vector<32x128xf32>
    %c0_20 = arith.constant 0 : index
    %c0_21 = arith.constant 0 : index
    %43 = vector.load %arg5[%c0_20, %c0_21] : memref<32x16xf32, #tpu.memory_space<vmem>>, vector<32x16xf32>
    %cst_22 = arith.constant dense<0.000000e+00> : vector<32x128xf32>
    %44 = tpu.matmul %43, %1, %cst_22 {dimension_numbers = #tpu.dot_dimension_numbers<[1], [1], [0], [0], [0, 0, 1, 0], [], []>} : vector<32x16xf32>, vector<128x16xf32>, vector<32x128xf32> -> vector<32x128xf32>
    %c0_23 = arith.constant 0 : index
    %c0_24 = arith.constant 0 : index
    %45 = vector.load %arg6[%c0_23, %c0_24] : memref<32x1xf32, #tpu.memory_space<vmem>>, vector<32x1xf32>
    %46 = vector.broadcast %45 : vector<32x1xf32> to vector<32x128xf32>
    %47 = arith.addf %44, %46 : vector<32x128xf32>
    %48 = math.absf %47 : vector<32x128xf32>
    %cst_25 = arith.constant 0.707106769 : f32
    %49 = vector.broadcast %cst_25 : f32 to vector<32x128xf32>
    %50 = arith.mulf %48, %49 : vector<32x128xf32>
    %cst_26 = arith.constant 0.327591091 : f32
    %51 = vector.broadcast %cst_26 : f32 to vector<32x128xf32>
    %52 = arith.mulf %51, %50 : vector<32x128xf32>
    %cst_27 = arith.constant 1.000000e+00 : f32
    %53 = vector.broadcast %cst_27 : f32 to vector<32x128xf32>
    %54 = arith.addf %53, %52 : vector<32x128xf32>
    %cst_28 = arith.constant 1.000000e+00 : f32
    %55 = vector.broadcast %cst_28 : f32 to vector<32x128xf32>
    %56 = arith.divf %55, %54 : vector<32x128xf32>
    %cst_29 = arith.constant 1.06140542 : f32
    %57 = vector.broadcast %cst_29 : f32 to vector<32x128xf32>
    %58 = arith.mulf %56, %57 : vector<32x128xf32>
    %cst_30 = arith.constant -1.45315206 : f32
    %59 = vector.broadcast %cst_30 : f32 to vector<32x128xf32>
    %60 = arith.addf %59, %58 : vector<32x128xf32>
    %61 = arith.mulf %56, %60 : vector<32x128xf32>
    %cst_31 = arith.constant 1.42141378 : f32
    %62 = vector.broadcast %cst_31 : f32 to vector<32x128xf32>
    %63 = arith.addf %62, %61 : vector<32x128xf32>
    %64 = arith.mulf %56, %63 : vector<32x128xf32>
    %cst_32 = arith.constant -0.284496725 : f32
    %65 = vector.broadcast %cst_32 : f32 to vector<32x128xf32>
    %66 = arith.addf %65, %64 : vector<32x128xf32>
    %67 = arith.mulf %56, %66 : vector<32x128xf32>
    %cst_33 = arith.constant 0.254829586 : f32
    %68 = vector.broadcast %cst_33 : f32 to vector<32x128xf32>
    %69 = arith.addf %68, %67 : vector<32x128xf32>
    %70 = arith.mulf %56, %69 : vector<32x128xf32>
    %71 = arith.mulf %50, %50 : vector<32x128xf32>
    %cst_34 = arith.constant 0.000000e+00 : f32
    %72 = vector.broadcast %cst_34 : f32 to vector<32x128xf32>
    %73 = arith.subf %72, %71 : vector<32x128xf32>
    %74 = math.exp %73 : vector<32x128xf32>
    %75 = arith.mulf %70, %74 : vector<32x128xf32>
    %cst_35 = arith.constant 0.000000e+00 : f32
    %76 = vector.broadcast %cst_35 : f32 to vector<32x128xf32>
    %77 = arith.cmpf oge, %47, %76 : vector<32x128xf32>
    %cst_36 = arith.constant 2.000000e+00 : f32
    %78 = vector.broadcast %cst_36 : f32 to vector<32x128xf32>
    %79 = arith.subf %78, %75 : vector<32x128xf32>
    %80 = arith.select %77, %79, %75 : vector<32x128xi1>, vector<32x128xf32>
    %cst_37 = arith.constant 5.000000e-01 : f32
    %81 = vector.broadcast %cst_37 : f32 to vector<32x128xf32>
    %82 = arith.mulf %81, %47 : vector<32x128xf32>
    %83 = arith.mulf %82, %80 : vector<32x128xf32>
    %84 = arith.mulf %42, %83 : vector<32x128xf32>
    %c0_38 = arith.constant 0 : index
    %c0_39 = arith.constant 0 : index
    %85 = vector.load %arg7[%c0_38, %c0_39] : memref<32x32xf32, #tpu.memory_space<vmem>>, vector<32x32xf32>
    %cst_40 = arith.constant dense<0.000000e+00> : vector<32x128xf32>
    %86 = tpu.matmul %85, %42, %cst_40 {dimension_numbers = #tpu.dot_dimension_numbers<[1], [0], [0], [1], [0, 0, 1, 1], [], []>} : vector<32x32xf32>, vector<32x128xf32>, vector<32x128xf32> -> vector<32x128xf32>
    %c0_41 = arith.constant 0 : index
    %c0_42 = arith.constant 0 : index
    %87 = vector.load %arg8[%c0_41, %c0_42] : memref<32x32xf32, #tpu.memory_space<vmem>>, vector<32x32xf32>
    %cst_43 = arith.constant dense<0.000000e+00> : vector<32x128xf32>
    %88 = tpu.matmul %87, %83, %cst_43 {dimension_numbers = #tpu.dot_dimension_numbers<[1], [0], [0], [1], [0, 0, 1, 1], [], []>} : vector<32x32xf32>, vector<32x128xf32>, vector<32x128xf32> -> vector<32x128xf32>
    %89 = arith.addf %86, %88 : vector<32x128xf32>
    %c0_44 = arith.constant 0 : index
    %c0_45 = arith.constant 0 : index
    %90 = vector.load %arg9[%c0_44, %c0_45] : memref<32x32xf32, #tpu.memory_space<vmem>>, vector<32x32xf32>
    %cst_46 = arith.constant dense<0.000000e+00> : vector<32x128xf32>
    %91 = tpu.matmul %90, %84, %cst_46 {dimension_numbers = #tpu.dot_dimension_numbers<[1], [0], [0], [1], [0, 0, 1, 1], [], []>} : vector<32x32xf32>, vector<32x128xf32>, vector<32x128xf32> -> vector<32x128xf32>
    %92 = arith.addf %89, %91 : vector<32x128xf32>
    %c0_47 = arith.constant 0 : index
    %c0_48 = arith.constant 0 : index
    %93 = vector.load %arg10[%c0_47, %c0_48] : memref<32x1xf32, #tpu.memory_space<vmem>>, vector<32x1xf32>
    %94 = vector.broadcast %93 : vector<32x1xf32> to vector<32x128xf32>
    %95 = arith.addf %92, %94 : vector<32x128xf32>
    %96 = math.absf %95 : vector<32x128xf32>
    %cst_49 = arith.constant 0.707106769 : f32
    %97 = vector.broadcast %cst_49 : f32 to vector<32x128xf32>
    %98 = arith.mulf %96, %97 : vector<32x128xf32>
    %cst_50 = arith.constant 0.327591091 : f32
    %99 = vector.broadcast %cst_50 : f32 to vector<32x128xf32>
    %100 = arith.mulf %99, %98 : vector<32x128xf32>
    %cst_51 = arith.constant 1.000000e+00 : f32
    %101 = vector.broadcast %cst_51 : f32 to vector<32x128xf32>
    %102 = arith.addf %101, %100 : vector<32x128xf32>
    %cst_52 = arith.constant 1.000000e+00 : f32
    %103 = vector.broadcast %cst_52 : f32 to vector<32x128xf32>
    %104 = arith.divf %103, %102 : vector<32x128xf32>
    %cst_53 = arith.constant 1.06140542 : f32
    %105 = vector.broadcast %cst_53 : f32 to vector<32x128xf32>
    %106 = arith.mulf %104, %105 : vector<32x128xf32>
    %cst_54 = arith.constant -1.45315206 : f32
    %107 = vector.broadcast %cst_54 : f32 to vector<32x128xf32>
    %108 = arith.addf %107, %106 : vector<32x128xf32>
    %109 = arith.mulf %104, %108 : vector<32x128xf32>
    %cst_55 = arith.constant 1.42141378 : f32
    %110 = vector.broadcast %cst_55 : f32 to vector<32x128xf32>
    %111 = arith.addf %110, %109 : vector<32x128xf32>
    %112 = arith.mulf %104, %111 : vector<32x128xf32>
    %cst_56 = arith.constant -0.284496725 : f32
    %113 = vector.broadcast %cst_56 : f32 to vector<32x128xf32>
    %114 = arith.addf %113, %112 : vector<32x128xf32>
    %115 = arith.mulf %104, %114 : vector<32x128xf32>
    %cst_57 = arith.constant 0.254829586 : f32
    %116 = vector.broadcast %cst_57 : f32 to vector<32x128xf32>
    %117 = arith.addf %116, %115 : vector<32x128xf32>
    %118 = arith.mulf %104, %117 : vector<32x128xf32>
    %119 = arith.mulf %98, %98 : vector<32x128xf32>
    %cst_58 = arith.constant 0.000000e+00 : f32
    %120 = vector.broadcast %cst_58 : f32 to vector<32x128xf32>
    %121 = arith.subf %120, %119 : vector<32x128xf32>
    %122 = math.exp %121 : vector<32x128xf32>
    %123 = arith.mulf %118, %122 : vector<32x128xf32>
    %cst_59 = arith.constant 0.000000e+00 : f32
    %124 = vector.broadcast %cst_59 : f32 to vector<32x128xf32>
    %125 = arith.cmpf oge, %95, %124 : vector<32x128xf32>
    %cst_60 = arith.constant 2.000000e+00 : f32
    %126 = vector.broadcast %cst_60 : f32 to vector<32x128xf32>
    %127 = arith.subf %126, %123 : vector<32x128xf32>
    %128 = arith.select %125, %127, %123 : vector<32x128xi1>, vector<32x128xf32>
    %cst_61 = arith.constant 5.000000e-01 : f32
    %129 = vector.broadcast %cst_61 : f32 to vector<32x128xf32>
    %130 = arith.mulf %129, %95 : vector<32x128xf32>
    %131 = arith.mulf %130, %128 : vector<32x128xf32>
    %c0_62 = arith.constant 0 : index
    %c0_63 = arith.constant 0 : index
    %132 = vector.load %arg11[%c0_62, %c0_63] : memref<16x32xf32, #tpu.memory_space<vmem>>, vector<16x32xf32>
    %cst_64 = arith.constant dense<0.000000e+00> : vector<16x128xf32>
    %133 = tpu.matmul %132, %131, %cst_64 {dimension_numbers = #tpu.dot_dimension_numbers<[1], [0], [0], [1], [0, 0, 1, 1], [], []>} : vector<16x32xf32>, vector<32x128xf32>, vector<16x128xf32> -> vector<16x128xf32>
    %c0_65 = arith.constant 0 : index
    %c0_66 = arith.constant 0 : index
    %134 = vector.load %arg12[%c0_65, %c0_66] : memref<16x1xf32, #tpu.memory_space<vmem>>, vector<16x1xf32>
    %135 = vector.broadcast %134 : vector<16x1xf32> to vector<16x128xf32>
    %136 = arith.addf %133, %135 : vector<16x128xf32>
    %137 = math.absf %136 : vector<16x128xf32>
    %cst_67 = arith.constant 0.707106769 : f32
    %138 = vector.broadcast %cst_67 : f32 to vector<16x128xf32>
    %139 = arith.mulf %137, %138 : vector<16x128xf32>
    %cst_68 = arith.constant 0.327591091 : f32
    %140 = vector.broadcast %cst_68 : f32 to vector<16x128xf32>
    %141 = arith.mulf %140, %139 : vector<16x128xf32>
    %cst_69 = arith.constant 1.000000e+00 : f32
    %142 = vector.broadcast %cst_69 : f32 to vector<16x128xf32>
    %143 = arith.addf %142, %141 : vector<16x128xf32>
    %cst_70 = arith.constant 1.000000e+00 : f32
    %144 = vector.broadcast %cst_70 : f32 to vector<16x128xf32>
    %145 = arith.divf %144, %143 : vector<16x128xf32>
    %cst_71 = arith.constant 1.06140542 : f32
    %146 = vector.broadcast %cst_71 : f32 to vector<16x128xf32>
    %147 = arith.mulf %145, %146 : vector<16x128xf32>
    %cst_72 = arith.constant -1.45315206 : f32
    %148 = vector.broadcast %cst_72 : f32 to vector<16x128xf32>
    %149 = arith.addf %148, %147 : vector<16x128xf32>
    %150 = arith.mulf %145, %149 : vector<16x128xf32>
    %cst_73 = arith.constant 1.42141378 : f32
    %151 = vector.broadcast %cst_73 : f32 to vector<16x128xf32>
    %152 = arith.addf %151, %150 : vector<16x128xf32>
    %153 = arith.mulf %145, %152 : vector<16x128xf32>
    %cst_74 = arith.constant -0.284496725 : f32
    %154 = vector.broadcast %cst_74 : f32 to vector<16x128xf32>
    %155 = arith.addf %154, %153 : vector<16x128xf32>
    %156 = arith.mulf %145, %155 : vector<16x128xf32>
    %cst_75 = arith.constant 0.254829586 : f32
    %157 = vector.broadcast %cst_75 : f32 to vector<16x128xf32>
    %158 = arith.addf %157, %156 : vector<16x128xf32>
    %159 = arith.mulf %145, %158 : vector<16x128xf32>
    %160 = arith.mulf %139, %139 : vector<16x128xf32>
    %cst_76 = arith.constant 0.000000e+00 : f32
    %161 = vector.broadcast %cst_76 : f32 to vector<16x128xf32>
    %162 = arith.subf %161, %160 : vector<16x128xf32>
    %163 = math.exp %162 : vector<16x128xf32>
    %164 = arith.mulf %159, %163 : vector<16x128xf32>
    %cst_77 = arith.constant 0.000000e+00 : f32
    %165 = vector.broadcast %cst_77 : f32 to vector<16x128xf32>
    %166 = arith.cmpf oge, %136, %165 : vector<16x128xf32>
    %cst_78 = arith.constant 2.000000e+00 : f32
    %167 = vector.broadcast %cst_78 : f32 to vector<16x128xf32>
    %168 = arith.subf %167, %164 : vector<16x128xf32>
    %169 = arith.select %166, %168, %164 : vector<16x128xi1>, vector<16x128xf32>
    %cst_79 = arith.constant 5.000000e-01 : f32
    %170 = vector.broadcast %cst_79 : f32 to vector<16x128xf32>
    %171 = arith.mulf %170, %136 : vector<16x128xf32>
    %172 = arith.mulf %171, %169 : vector<16x128xf32>
    %c0_80 = arith.constant 0 : index
    %c0_81 = arith.constant 0 : index
    %173 = vector.load %arg13[%c0_80, %c0_81] : memref<1x16xf32, #tpu.memory_space<vmem>>, vector<1x16xf32>
    %cst_82 = arith.constant dense<0.000000e+00> : vector<1x128xf32>
    %174 = tpu.matmul %173, %172, %cst_82 {dimension_numbers = #tpu.dot_dimension_numbers<[1], [0], [0], [1], [0, 0, 1, 1], [], []>} : vector<1x16xf32>, vector<16x128xf32>, vector<1x128xf32> -> vector<1x128xf32>
    %c0_83 = arith.constant 0 : index
    %175 = memref.load %arg14[%c0_83] : memref<1xf32, #tpu.memory_space<smem>>
    %176 = vector.broadcast %175 : f32 to vector<1x128xf32>
    %177 = arith.addf %174, %176 : vector<1x128xf32>
    %c0_84 = arith.constant 0 : index
    %c0_85 = arith.constant 0 : index
    %178 = vector.load %arg15[%c0_84, %c0_85] : memref<1x128xf32, #tpu.memory_space<vmem>>, vector<1x128xf32>
    tpu.vector_store %arg15[%c0_84, %c0_85], %177 {strides = array<i32>} : memref<1x128xf32, #tpu.memory_space<vmem>>, vector<1x128xf32>,
    return
  }
  func.func @transform_0(%arg0: i32) -> (i32, i32) {
    %c0_i32 = arith.constant 0 : i32
    %c0_i32_0 = arith.constant 0 : i32
    return %arg0, %c0_i32 : i32, i32
  }
  func.func @transform_1(%arg0: i32) -> (i32, i32) {
    %c0_i32 = arith.constant 0 : i32
    %c0_i32_0 = arith.constant 0 : i32
    return %arg0, %c0_i32 : i32, i32
  }
  func.func @transform_2(%arg0: i32) -> (i32, i32) {
    %c0_i32 = arith.constant 0 : i32
    %c0_i32_0 = arith.constant 0 : i32
    %c0_i32_1 = arith.constant 0 : i32
    return %c0_i32, %c0_i32_0 : i32, i32
  }
  func.func @transform_3(%arg0: i32) -> (i32, i32) {
    %c0_i32 = arith.constant 0 : i32
    %c0_i32_0 = arith.constant 0 : i32
    %c0_i32_1 = arith.constant 0 : i32
    return %c0_i32, %c0_i32_0 : i32, i32
  }
  func.func @transform_4(%arg0: i32) -> (i32, i32) {
    %c0_i32 = arith.constant 0 : i32
    %c0_i32_0 = arith.constant 0 : i32
    %c0_i32_1 = arith.constant 0 : i32
    return %c0_i32, %c0_i32_0 : i32, i32
  }
  func.func @transform_5(%arg0: i32) -> (i32, i32) {
    %c0_i32 = arith.constant 0 : i32
    %c0_i32_0 = arith.constant 0 : i32
    %c0_i32_1 = arith.constant 0 : i32
    return %c0_i32, %c0_i32_0 : i32, i32
  }
  func.func @transform_6(%arg0: i32) -> (i32, i32) {
    %c0_i32 = arith.constant 0 : i32
    %c0_i32_0 = arith.constant 0 : i32
    %c0_i32_1 = arith.constant 0 : i32
    return %c0_i32, %c0_i32_0 : i32, i32
  }
  func.func @transform_7(%arg0: i32) -> (i32, i32) {
    %c0_i32 = arith.constant 0 : i32
    %c0_i32_0 = arith.constant 0 : i32
    %c0_i32_1 = arith.constant 0 : i32
    return %c0_i32, %c0_i32_0 : i32, i32
  }
  func.func @transform_8(%arg0: i32) -> (i32, i32) {
    %c0_i32 = arith.constant 0 : i32
    %c0_i32_0 = arith.constant 0 : i32
    %c0_i32_1 = arith.constant 0 : i32
    return %c0_i32, %c0_i32_0 : i32, i32
  }
  func.func @transform_9(%arg0: i32) -> (i32, i32) {
    %c0_i32 = arith.constant 0 : i32
    %c0_i32_0 = arith.constant 0 : i32
    %c0_i32_1 = arith.constant 0 : i32
    return %c0_i32, %c0_i32_0 : i32, i32
  }
  func.func @transform_10(%arg0: i32) -> (i32, i32) {
    %c0_i32 = arith.constant 0 : i32
    %c0_i32_0 = arith.constant 0 : i32
    %c0_i32_1 = arith.constant 0 : i32
    return %c0_i32, %c0_i32_0 : i32, i32
  }
  func.func @transform_11(%arg0: i32) -> (i32, i32) {
    %c0_i32 = arith.constant 0 : i32
    %c0_i32_0 = arith.constant 0 : i32
    %c0_i32_1 = arith.constant 0 : i32
    return %c0_i32, %c0_i32_0 : i32, i32
  }
  func.func @transform_12(%arg0: i32) -> (i32, i32) {
    %c0_i32 = arith.constant 0 : i32
    %c0_i32_0 = arith.constant 0 : i32
    %c0_i32_1 = arith.constant 0 : i32
    return %c0_i32, %c0_i32_0 : i32, i32
  }
  func.func @transform_13(%arg0: i32) -> i32 {
    %c0_i32 = arith.constant 0 : i32
    %c0_i32_0 = arith.constant 0 : i32
    return %c0_i32 : i32
  }
  func.func @transform_14(%arg0: i32) -> (i32, i32) {
    %c0_i32 = arith.constant 0 : i32
    %c0_i32_0 = arith.constant 0 : i32
    return %c0_i32, %arg0 : i32, i32
  }
}

</mosaic_0001>

<bundles_post_ra>
// kernel: tpu_custom_call.1
= control target key start
LH: loop header
LB: loop body
LE: loop exit
PB: predicated region body
PF: predicated region fallthrough
CT: control target
= control target key end

     0   :  { %s2787_s0 = inlined_call_operand.vmem [shape: f32[256,16], index: 0, kind: input, shape index: {}]   ;;  %s2788_s1 = inlined_call_operand.vmem [shape: f32[256,16], index: 1, kind: input, shape index: {}]   ;;  %s2789_s2 = inlined_call_operand.vmem [shape: f32[32,16], index: 2, kind: input, shape index: {}]   ;;  %s2790_s3 = inlined_call_operand.vmem [shape: f32[32,1], index: 3, kind: input, shape index: {}]   ;;  %s2791_s4 = inlined_call_operand.vmem [shape: f32[32,16], index: 4, kind: input, shape index: {}]   ;;  %s2792_s5 = inlined_call_operand.vmem [shape: f32[32,1], index: 5, kind: input, shape index: {}]   ;;  %s2793_s6 = inlined_call_operand.vmem [shape: f32[32,32], index: 6, kind: input, shape index: {}]   ;;  %s2794_s7 = inlined_call_operand.vmem [shape: f32[32,32], index: 7, kind: input, shape index: {}]   ;;  %s2795_s8 = inlined_call_operand.vmem [shape: f32[32,32], index: 8, kind: input, shape index: {}]   ;;  %s2796_s9 = inlined_call_operand.vmem [shape: f32[32,1], index: 9, kind: input, shape index: {}]   ;;  %s2797_s10 = inlined_call_operand.vmem [shape: f32[16,32], index: 10, kind: input, shape index: {}]   ;;  %s2798_s11 = inlined_call_operand.vmem [shape: f32[16,1], index: 11, kind: input, shape index: {}]   ;;  %s2799_s12 = inlined_call_operand.vmem [shape: f32[1,16], index: 12, kind: input, shape index: {}]   ;;  %s2800_s13 = inlined_call_operand.<no memory space> [shape: f32[1], index: 13, kind: input, shape index: {}]   ;;  %s2801_s14 = inlined_call_operand.hbm [shape: f32[1,256], index: 14, kind: output, shape index: {}]  }
   0x1   :  { %19 = sst [smem:[#allocation2]] %s2800_s13 }
   0x2   :  { %20 = vsyncpa [#allocation4], 0 }
   0x3   :  { %22 = vsyncpa [#allocation4 + $0x1], 0  ;;  %s2330_s15 = smov 0   ;;  %s2332_s16 = smov 0  }
   0x4   :  { %s2334_s17 = smov 0   ;;  %s2336_s18 = smov 0  }
   0x5 LB: > { %2806 = sst [smem:[#allocation6_spill]] %s2242_s17  ;;  %s1810_s13 = sadd.s32 4294967295, %s2246_s18   ;;  %s2246_s18 = sphi %s2336_s18, %s2813_s18   ;;  %s2242_s17 = sphi %s2334_s17, %s2815_s17   ;;  %s2238_s16 = sphi %s2332_s16, %s2817_s16   ;;  %s2234_s15 = sphi %s2330_s15, %s2816_s15  }
   0x6   : > { %s1811_s19 = sadd.s32 4294967294, %s2246_s18   ;;  %s2353_s20 = sadd.s32 1, %s2246_s18  }
   0x7   : > { %2807 = sst [smem:[#allocation7_spill]] %s2353_s20  ;;  %s339_s21 = sadd.s32 1, %s2242_s17 }
   0x8   : > { %s336_s22 = ssub.s32 %s2246_s18, %s2353_s20  ;;  %p349_p0 = scmp.ne.s32.totalorder %s2242_s17, %s2238_s16 }
   0x9   : > { %p337_p1 = scmp.eq.s32.totalorder %s336_s22, 0  ;;  %p350_p2 = scmp.eq.s32.totalorder %s1810_s13, 1 }
   0xa   : > { %p355_p3 = scmp.ne.s32.totalorder %s2238_s16, %s2234_s15  ;;  %p356_p4 = scmp.eq.s32.totalorder %s1811_s19, 1 }
   0xb   : > { %s2363_s23 = scalar_select %p337_p1, %s2242_s17, %s339_s21  }
   0xc   : > { %p2365_p5 = por %p350_p2, %p349_p0  ;;  %p2369_p6 = por %p356_p4, %p355_p3 }
   0xd   : > { %2808 = sst [smem:[#allocation8_spill]] %s2363_s23  ;;  %p1814_p7 = scmp.ge.s32.totalorder %s2246_s18, 1 }
   0xe   : > { %s2810_s25 = scalar_select %p2369_p6, 1, 0 }
   0xf   : > { %p428_p8 = scmp.lt.s32.totalorder %s2246_s18, 3 }
  0x10   : > { %2811 = sst [smem:[#allocation9_spill]] %s2810_s25 }
  0x11   : > { %p429_p9 = pnand %p1814_p7, %p428_p8 }
  0x12   : > { %s2375_s26 = sshll.u32 (!%p429_p9), %s1810_s13, 4  ;;  %s1655_s29 = sld [smem:[#allocation2]] (!%p429_p9) }
  0x13   : > { %432 = sbr.rel (%p429_p9) target bundleno = 1068 (0x42c), region = 76  ;;  %p479_p10 = scmp.lt.s32.totalorder (!%p429_p9), %s2375_s26, 31 }
  0x14   : > { %s2251_s28 = smov (!%p429_p9), [#allocation3]  }
  0x18   : > { %vm550_vm0 = vcmask 130048   ;;  %v522_v0 = vld [vmem:[%s2789_s2] sm:$0xff]  ;;  %v2248_v2 = vmov 0   ;;  %v803_v3 = vld [vmem:[%s2792_s5 + $0x18] sm:$0xff]  ;;  %s480_s21 = scalar_select %p479_p10, %s2375_s26, 31  ;;  %v801_v4 = vld [vmem:[%s2792_s5 + $0x8] sm:$0xff] }
  0x19   : > { %v796_v1 = vld [vmem:[%s2791_s4] sm:$0xff]  ;;  %1982 = vmatprep.mubr.msk.f32.mxu0 %vm550_vm0, %v522_v0  ;;  %2128 = vset.pattern.permute.xlu0 %v2248_v2  ;;  %v802_v5 = vld [vmem:[%s2792_s5 + $0x10] sm:$0xff]  ;;  %v529_v10 = vld [vmem:[%s2790_s3 + $0x18] sm:$0xff]  ;;  %vm1081_vm1 = vcmask 261120   ;;  %vm2250_vm14 = vmmov 0  }
  0x1a   : > { %2020 = vmatprep.mubr.msk.f32.mxu1 %vm550_vm0, %v796_v1  ;;  %2129 = vset.pattern.permute.xlu1 %v2248_v2  ;;  %s1816_s30 = sshll.u32 %s480_s21, 3  ;;  %v800_v11 = vld [vmem:[%s2792_s5] sm:$0xff]  ;;  %v528_v14 = vld [vmem:[%s2790_s3 + $0x10] sm:$0xff]  ;;  %v527_v15 = vld [vmem:[%s2790_s3 + $0x8] sm:$0xff]  ;;  %s2752_s21 = scalar_lea.hbm %s2801_s14, %s2375_s26 }
  0x1b   : > { %821 = vperm.xlu0 %2128, %v803_v3   ;;  %811 = vperm.xlu1 %2129, %v801_v4   ;;  %s2399_s20 = scalar_lea.vmem %s2787_s0, %s1816_s30  ;;  %s2404_s25 = scalar_lea.vmem %s2788_s1, %s1816_s30  ;;  %v526_v18 = vld [vmem:[%s2790_s3] sm:$0xff]  ;;  %v1384_v19 = vld [vmem:[%s2796_s9 + $0x18] sm:$0xff]  ;;  %v1383_v22 = vld [vmem:[%s2796_s9 + $0x10] sm:$0xff] }
  0x1c   : > { %v505_v6 = vld [vmem:[%s2399_s20 + $0x78] sm:$0xff]  ;;  %v504_v8 = vld [vmem:[%s2399_s20 + $0x70] sm:$0xff]  ;;  %v503_v12 = vld [vmem:[%s2399_s20 + $0x68] sm:$0xff]  ;;  %s476_s30 = sand.u32 1, %s2238_s16  }
  0x1d   : > { %v521_v7 = vld [vmem:[%s2404_s25 + $0x78] sm:$0xff]  ;;  %1950 = vmatprep.subr.msk.mxu0 %vm550_vm0, %v505_v6  ;;  %v520_v9 = vld [vmem:[%s2404_s25 + $0x70] sm:$0xff]  ;;  %v519_v13 = vld [vmem:[%s2404_s25 + $0x68] sm:$0xff]  ;;  %s477_s13 = scalar_lea.vmem [#allocation3], %s476_s30  ;;  %s1732_s22 = scalar_lea.sflag [#allocation4], %s476_s30 }
  0x1e   : > { %1988 = vmatprep.subr.msk.mxu1 %vm550_vm0, %v521_v7  ;;  %1951 = vmatpush3.xpose.msk.msra.mxu0 %vm550_vm0, %v505_v6  ;;  %v502_v16 = vld [vmem:[%s2399_s20 + $0x60] sm:$0xff]  ;;  %v501_v20 = vld [vmem:[%s2399_s20 + $0x58] sm:$0xff]  ;;  %v1382_v23 = vld [vmem:[%s2796_s9 + $0x8] sm:$0xff]  ;;  %s1744_s19 = sshll.u32 %s477_s13, 4  ;;  %s1745_s19 = int_to_ptr.vmem [resolvable:$true] %s1744_s19 }
  0x1f   : > { %816 = vperm.xlu0 %2128, %v802_v5   ;;  %1989 = vmatpush3.xpose.msk.msra.mxu1 %vm550_vm0, %v521_v7  ;;  %v518_v17 = vld [vmem:[%s2404_s25 + $0x60] sm:$0xff]  ;;  %v517_v21 = vld [vmem:[%s2404_s25 + $0x58] sm:$0xff]  ;;  %v500_v24 = vld [vmem:[%s2399_s20 + $0x50] sm:$0xff]  ;;  %s2186_s27 = scalar_lea.vmem %s1745_s19, 16 }
  0x20   : > { %1952 = vmatprep.subr.msk.mxu0 %vm550_vm0, %v504_v8  ;;  %1990 = vmatprep.subr.msk.mxu1 %vm550_vm0, %v520_v9  ;;  %v516_v25 = vld [vmem:[%s2404_s25 + $0x50] sm:$0xff]  ;;  %v1381_v26 = vld [vmem:[%s2796_s9] sm:$0xff]  ;;  %v1512_v27 = vld [vmem:[%s2798_s11 + $0x8] sm:$0xff]  ;;  %p2187_p11 = scmp.ne.s32.totalorder %s1745_s19, %s2186_s27 }
  0x21   : > { %547 = vperm.xlu1 %2129, %v529_v10   ;;  %v499_v28 = vld [vmem:[%s2399_s20 + $0x48] sm:$0xff]  ;;  %v1511_v30 = vld [vmem:[%s2798_s11] sm:$0xff]  ;;  %v497_v33 = vld [vmem:[%s2399_s20 + $0x38] sm:$0xff] }
  0x22   : > { %1953 = vmatpush3.xpose.msk.msra.mxu0 %vm550_vm0, %v504_v8  ;;  %v515_v29 = vld [vmem:[%s2404_s25 + $0x48] sm:$0xff]  ;;  %v498_v31 = vld [vmem:[%s2399_s20 + $0x40] sm:$0xff]  ;;  %v513_v34 = vld [vmem:[%s2404_s25 + $0x38] sm:$0xff]  ;;  %p2188_p12 = pnand %p2187_p11, %p2365_p5 }
  0x23   : > { %806 = vperm.xlu0 %2128, %v800_v11   ;;  %1991 = vmatpush3.xpose.msk.msra.mxu1 %vm550_vm0, %v520_v9  ;;  %v514_v32 = vld [vmem:[%s2404_s25 + $0x40] sm:$0xff]  ;;  %v496_v35 = vld [vmem:[%s2399_s20 + $0x30] sm:$0xff]  ;;  %v495_v37 = vld [vmem:[%s2399_s20 + $0x28] sm:$0xff] }
  0x24   : > { %1954 = vmatprep.subr.msk.mxu0 %vm550_vm0, %v503_v12  ;;  %1992 = vmatprep.subr.msk.mxu1 %vm550_vm0, %v519_v13  ;;  %v512_v36 = vld [vmem:[%s2404_s25 + $0x30] sm:$0xff]  ;;  %v511_v38 = vld [vmem:[%s2404_s25 + $0x28] sm:$0xff]  ;;  %v494_v39 = vld [vmem:[%s2399_s20 + $0x20] sm:$0xff]  ;;  %p2189_p13 = pneg %p2188_p12 }
  0x25   : > { %542 = vperm.xlu1 %2129, %v528_v14   ;;  %v510_v40 = vld [vmem:[%s2404_s25 + $0x20] sm:$0xff]  ;;  %v493_v41 = vld [vmem:[%s2399_s20 + $0x18] sm:$0xff]  ;;  %v492_v43 = vld [vmem:[%s2399_s20 + $0x10] sm:$0xff] }
  0x26   : > { %1955 = vmatpush3.xpose.msk.msra.mxu0 %vm550_vm0, %v503_v12  ;;  %v509_v42 = vld [vmem:[%s2404_s25 + $0x18] sm:$0xff]  ;;  %v508_v44 = vld [vmem:[%s2404_s25 + $0x10] sm:$0xff]  ;;  %v491_v45 = vld [vmem:[%s2399_s20 + $0x8] sm:$0xff] }
  0x27   : > { %537 = vperm.xlu0 %2128, %v527_v15   ;;  %1993 = vmatpush3.xpose.msk.msra.mxu1 %vm550_vm0, %v519_v13  ;;  %v507_v46 = vld [vmem:[%s2404_s25 + $0x8] sm:$0xff]  ;;  %v490_v47 = vld [vmem:[%s2399_s20] sm:$0xff]  ;;  %v524_v51 = vld [vmem:[%s2789_s2 + $0x10] sm:$0xff]  ;;  %s2190_s20 = sshll.u32 %s2251_s28, 4  ;;  %s2191_s20 = int_to_ptr.vmem [resolvable:$false] %s2190_s20 }
  0x28   : > { %1956 = vmatprep.subr.msk.mxu0 %vm550_vm0, %v502_v16  ;;  %1994 = vmatprep.subr.msk.mxu1 %vm550_vm0, %v518_v17  ;;  %v506_v48 = vld [vmem:[%s2404_s25] sm:$0xff]  ;;  %v523_v49 = vld [vmem:[%s2789_s2 + $0x8] sm:$0xff]  ;;  %v798_v52 = vld [vmem:[%s2791_s4 + $0x10] sm:$0xff]  ;;  %s2192_s25 = scalar_lea.vmem %s2191_s20, 32  ;;  %p2193_p0 = scmp.lt.s32.totalorder %s1745_s19, %s2191_s20 }
  0x29   : > { %532 = vperm.xlu1 %2129, %v526_v18   ;;  %v797_v50 = vld [vmem:[%s2791_s4 + $0x8] sm:$0xff]  ;;  %v525_v53 = vld [vmem:[%s2789_s2 + $0x18] sm:$0xff]  ;;  %v1077_v55 = vld [vmem:[%s2794_s7] sm:$0xff]  ;;  %p2194_p1 = scmp.lt.s32.totalorder %s2192_s25, %s2186_s27 }
  0x2a   : > { %1957 = vmatpush3.xpose.msk.msra.mxu0 %vm550_vm0, %v502_v16  ;;  %v799_v54 = vld [vmem:[%s2791_s4 + $0x18] sm:$0xff]  ;;  %v1073_v56 = vld [vmem:[%s2793_s6] sm:$0xff] }
  0x2b   : > { %1402 = vperm.xlu0 %2128, %v1384_v19   ;;  %1995 = vmatpush3.xpose.msk.msra.mxu1 %vm550_vm0, %v518_v17  ;;  %p2195_p2 = por %p2194_p1, %p2193_p0 }
  0x2c   : > { %1958 = vmatprep.subr.msk.mxu0 %vm550_vm0, %v501_v20  ;;  %1996 = vmatprep.subr.msk.mxu1 %vm550_vm0, %v517_v21 }
  0x2d   : > { %1397 = vperm.xlu1 %2129, %v1383_v22   ;;  %p2196_p3 = pnand %p2195_p2, %p2189_p13 }
  0x2e   : > { %1959 = vmatpush3.xpose.msk.msra.mxu0 %vm550_vm0, %v501_v20 }
  0x2f   : > { %1392 = vperm.xlu0 %2128, %v1382_v23   ;;  %1997 = vmatpush3.xpose.msk.msra.mxu1 %vm550_vm0, %v517_v21 }
  0x30   : > { %1960 = vmatprep.subr.msk.mxu0 %vm550_vm0, %v500_v24  ;;  %1998 = vmatprep.subr.msk.mxu1 %vm550_vm0, %v516_v25 }
  0x31   : > { %1387 = vperm.xlu1 %2129, %v1381_v26  }
  0x32   : > { %1961 = vmatpush3.xpose.msk.msra.mxu0 %vm550_vm0, %v500_v24 }
  0x33   : > { %1520 = vperm.xlu0 %2128, %v1512_v27   ;;  %1999 = vmatpush3.xpose.msk.msra.mxu1 %vm550_vm0, %v516_v25 }
  0x34   : > { %1962 = vmatprep.subr.msk.mxu0 %vm550_vm0, %v499_v28  ;;  %2000 = vmatprep.subr.msk.mxu1 %vm550_vm0, %v515_v29 }
  0x35   : > { %1515 = vperm.xlu1 %2129, %v1511_v30  }
  0x36   : > { %1963 = vmatpush3.xpose.msk.msra.mxu0 %vm550_vm0, %v499_v28 }
  0x37   : > { %2001 = vmatpush3.xpose.msk.msra.mxu1 %vm550_vm0, %v515_v29  ;;  %1964 = vmatprep.subr.msk.mxu0 %vm550_vm0, %v498_v31 }
  0x38   : > { %2002 = vmatprep.subr.msk.mxu1 %vm550_vm0, %v514_v32 }
  0x3a   : > { %1965 = vmatpush3.xpose.msk.msra.mxu0 %vm550_vm0, %v498_v31 }
  0x3b   : > { %2003 = vmatpush3.xpose.msk.msra.mxu1 %vm550_vm0, %v514_v32  ;;  %1966 = vmatprep.subr.msk.mxu0 %vm550_vm0, %v497_v33 }
  0x3c   : > { %2004 = vmatprep.subr.msk.mxu1 %vm550_vm0, %v513_v34 }
  0x3e   : > { %1967 = vmatpush3.xpose.msk.msra.mxu0 %vm550_vm0, %v497_v33 }
  0x3f   : > { %2005 = vmatpush3.xpose.msk.msra.mxu1 %vm550_vm0, %v513_v34  ;;  %1968 = vmatprep.subr.msk.mxu0 %vm550_vm0, %v496_v35 }
  0x40   : > { %2006 = vmatprep.subr.msk.mxu1 %vm550_vm0, %v512_v36 }
  0x42   : > { %1969 = vmatpush3.xpose.msk.msra.mxu0 %vm550_vm0, %v496_v35 }
  0x43   : > { %2007 = vmatpush3.xpose.msk.msra.mxu1 %vm550_vm0, %v512_v36  ;;  %1970 = vmatprep.subr.msk.mxu0 %vm550_vm0, %v495_v37 }
  0x44   : > { %2008 = vmatprep.subr.msk.mxu1 %vm550_vm0, %v511_v38 }
  0x46   : > { %1971 = vmatpush3.xpose.msk.msra.mxu0 %vm550_vm0, %v495_v37 }
  0x47   : > { %2009 = vmatpush3.xpose.msk.msra.mxu1 %vm550_vm0, %v511_v38  ;;  %1972 = vmatprep.subr.msk.mxu0 %vm550_vm0, %v494_v39 }
  0x48   : > { %2010 = vmatprep.subr.msk.mxu1 %vm550_vm0, %v510_v40 }
  0x4a   : > { %1973 = vmatpush3.xpose.msk.msra.mxu0 %vm550_vm0, %v494_v39 }
  0x4b   : > { %2011 = vmatpush3.xpose.msk.msra.mxu1 %vm550_vm0, %v510_v40  ;;  %1974 = vmatprep.subr.msk.mxu0 %vm550_vm0, %v493_v41 }
  0x4c   : > { %2012 = vmatprep.subr.msk.mxu1 %vm550_vm0, %v509_v42 }
  0x4e   : > { %1975 = vmatpush3.xpose.msk.msra.mxu0 %vm550_vm0, %v493_v41 }
  0x4f   : > { %2013 = vmatpush3.xpose.msk.msra.mxu1 %vm550_vm0, %v509_v42  ;;  %1976 = vmatprep.subr.msk.mxu0 %vm550_vm0, %v492_v43 }
  0x50   : > { %2014 = vmatprep.subr.msk.mxu1 %vm550_vm0, %v508_v44 }
  0x52   : > { %1977 = vmatpush3.xpose.msk.msra.mxu0 %vm550_vm0, %v492_v43 }
  0x53   : > { %2015 = vmatpush3.xpose.msk.msra.mxu1 %vm550_vm0, %v508_v44  ;;  %1978 = vmatprep.subr.msk.mxu0 %vm550_vm0, %v491_v45 }
  0x54   : > { %2016 = vmatprep.subr.msk.mxu1 %vm550_vm0, %v507_v46 }
  0x56   : > { %1979 = vmatpush3.xpose.msk.msra.mxu0 %vm550_vm0, %v491_v45 }
  0x57   : > { %2017 = vmatpush3.xpose.msk.msra.mxu1 %vm550_vm0, %v507_v46  ;;  %1980 = vmatprep.subr.msk.mxu0 %vm550_vm0, %v490_v47 }
  0x58   : > { %2018 = vmatprep.subr.msk.mxu1 %vm550_vm0, %v506_v48 }
  0x5a   : > { %1981 = vmatpush3.xpose.msk.msra.mxu0 %vm550_vm0, %v490_v47 }
  0x5b   : > { %2019 = vmatpush3.xpose.msk.msra.mxu1 %vm550_vm0, %v506_v48 }
  0x5d   : > { %1983 = vmatmul.mubr.msk.f32.vlgmr.msra.gmra.mxu0 %vm550_vm0, %v523_v49 }
  0x5e   : > { %2021 = vmatmul.mubr.msk.f32.vlgmr.msra.gmra.mxu1 %vm550_vm0, %v797_v50  ;;  %1985 = vmatprep.mubr.msk.f32.mxu0 %vm550_vm0, %v524_v51 }
  0x5f   : > { %2023 = vmatprep.mubr.msk.f32.mxu1 %vm550_vm0, %v798_v52 }
  0x61   : > { %1986 = vmatmul.mubr.msk.f32.gmra.mxu0 %vm550_vm0, %v525_v53 }
  0x62   : > { %2024 = vmatmul.mubr.msk.f32.gmra.mxu1 %vm550_vm0, %v799_v54  ;;  %2034 = vmatprep.mubr.msk.f32.mxu0 %vm1081_vm1, %v1077_v55 }
  0x63   : > { %2048 = vmatprep.mubr.msk.f32.mxu1 %vm1081_vm1, %v1073_v56 }
  0x96   : > { %v822_v57 = vpop.permute.xlu0 %821  ;;  %v812_v58 = vpop.permute.xlu1 %811 }
  0x9a   : > { %v817_v59 = vpop.permute.xlu0 %816 }
  0x9c   : > { %v548_v60 = vpop.permute.xlu1 %547 }
  0x9e   : > { %v807_v61 = vpop.permute.xlu0 %806 }
  0xa0   : > { %v543_v62 = vpop.permute.xlu1 %542 }
  0xa2   : > { %v538_v63 = vpop.permute.xlu0 %537 }
  0xa4   : > { %v533_v6 = vpop.permute.xlu1 %532 }
 0x11d   : > { %v1984_v0 = vpop.f32.mrf.mxu0 }
 0x11e   : > { %v2022_v1 = vpop.f32.mrf.mxu1  ;;  %v2567_v2 = vadd.f32 %v1984_v0, %v538_v63 }
 0x11f   : > { %v2569_v3 = vadd.f32 %v2022_v1, %v812_v58  ;;  %v677_v4 = vpop.f32.mrf.mxu0 }
 0x120   : > { %v950_v5 = vpop.f32.mrf.mxu1  ;;  %v697_v7 = vand.u32 2147483647, %v2567_v2  ;;  %v2573_v9 = vadd.f32 %v677_v4, %v533_v6  ;;  %vm777_vm4 = vcmp.ge.f32.partialorder %v2567_v2, 0.0 }
 0x121   : > { %v970_v8 = vand.u32 2147483647, %v2569_v3  ;;  %v2575_v10 = vadd.f32 %v950_v5, %v807_v61  ;;  %v1987_v11 = vpop.f32.mrf.mxu0  ;;  %vm1050_vm5 = vcmp.ge.f32.partialorder %v2569_v3, 0.0 }
 0x122   : > { %v701_v12 = vmul.f32 0.70710677, %v697_v7  ;;  %v696_v14 = vand.u32 2147483647, %v2573_v9  ;;  %v2579_v18 = vadd.f32 %v1987_v11, %v548_v60  ;;  %v2025_v19 = vpop.f32.mrf.mxu1  ;;  %vm776_vm8 = vcmp.ge.f32.partialorder %v2573_v9, 0.0 }
 0x123   : > { %v974_v13 = vmul.f32 0.70710677, %v970_v8  ;;  %v969_v15 = vand.u32 2147483647, %v2575_v10  ;;  %v2581_v26 = vadd.f32 %v2025_v19, %v822_v57  ;;  %v687_v32 = vpop.f32.mrf.mxu0  ;;  %vm1049_vm9 = vcmp.ge.f32.partialorder %v2575_v10, 0.0 }
 0x124   : > { %v705_v16 = vmul.f32 0.3275911, %v701_v12  ;;  %v700_v20 = vmul.f32 0.70710677, %v696_v14  ;;  %v699_v27 = vand.u32 2147483647, %v2579_v18  ;;  %v960_v34 = vpop.f32.mrf.mxu1  ;;  %v2585_v37 = vadd.f32 %v687_v32, %v543_v62 }
 0x125   : > { %v978_v17 = vmul.f32 0.3275911, %v974_v13  ;;  %v973_v21 = vmul.f32 0.70710677, %v969_v15  ;;  %v972_v31 = vand.u32 2147483647, %v2581_v26  ;;  %v2587_v39 = vadd.f32 %v960_v34, %v817_v59 }
 0x126   : > { %v709_v22 = vadd.f32 1.0, %v705_v16  ;;  %v704_v24 = vmul.f32 0.3275911, %v700_v20  ;;  %v703_v30 = vmul.f32 0.70710677, %v699_v27  ;;  %v757_v50 = vmul.f32 %v701_v12, %v701_v12 }
 0x127   : > { %v982_v23 = vadd.f32 1.0, %v978_v17  ;;  %v977_v25 = vmul.f32 0.3275911, %v973_v21  ;;  %v976_v35 = vmul.f32 0.70710677, %v972_v31  ;;  %v1030_v58 = vmul.f32 %v974_v13, %v974_v13 }
 0x128   : > { %2130 = vrcp.f32 %v709_v22  ;;  %v708_v28 = vadd.f32 1.0, %v704_v24  ;;  %v707_v33 = vmul.f32 0.3275911, %v703_v30  ;;  %v698_v40 = vand.u32 2147483647, %v2585_v37 }
 0x129   : > { %2132 = vrcp.f32 %v982_v23  ;;  %v981_v29 = vadd.f32 1.0, %v977_v25  ;;  %v980_v38 = vmul.f32 0.3275911, %v976_v35  ;;  %v971_v42 = vand.u32 2147483647, %v2587_v39 }
 0x12a   : > { %2134 = vrcp.f32 %v708_v28  ;;  %v711_v36 = vadd.f32 1.0, %v707_v33  ;;  %v702_v43 = vmul.f32 0.70710677, %v698_v40  ;;  %v759_v44 = vmul.f32 %v703_v30, %v703_v30 }
 0x12b   : > { %2136 = vrcp.f32 %v981_v29  ;;  %v984_v41 = vadd.f32 1.0, %v980_v38  ;;  %v975_v45 = vmul.f32 0.70710677, %v971_v42  ;;  %v1032_v59 = vmul.f32 %v976_v35, %v976_v35 }
 0x12c   : > { %2138 = vrcp.f32 %v711_v36  ;;  %v706_v46 = vmul.f32 0.3275911, %v702_v43  ;;  %v763_v53 = vsub.f32 0.0, %v759_v44  ;;  %v761_v61 = vsub.f32 0.0, %v757_v50 }
 0x12d   : > { %2140 = vrcp.f32 %v984_v41  ;;  %v979_v48 = vmul.f32 0.3275911, %v975_v45  ;;  %v756_v1 = vmul.f32 %v700_v20, %v700_v20  ;;  %v1029_v4 = vmul.f32 %v973_v21, %v973_v21 }
 0x12e   : > { %v710_v51 = vadd.f32 1.0, %v706_v46  ;;  %v770_v5 = vmul.f32 1.442695, %v763_v53  ;;  %v1034_v13 = vsub.f32 0.0, %v1030_v58  ;;  %v1036_v14 = vsub.f32 0.0, %v1032_v59 }
 0x12f   : > { %v983_v54 = vadd.f32 1.0, %v979_v48  ;;  %v758_v15 = vmul.f32 %v702_v43, %v702_v43  ;;  %v1031_v17 = vmul.f32 %v975_v45, %v975_v45  ;;  %v766_v21 = vmul.f32 1.442695, %v761_v61 }
 0x130   : > { %2142 = vrcp.f32 %v710_v51  ;;  %v760_v23 = vsub.f32 0.0, %v756_v1  ;;  %v1033_v24 = vsub.f32 0.0, %v1029_v4  ;;  %v1043_v31 = vmul.f32 1.442695, %v1036_v14 }
 0x131   : > { %2144 = vrcp.f32 %v983_v54  ;;  %v762_v32 = vsub.f32 0.0, %v758_v15  ;;  %v1035_v35 = vsub.f32 0.0, %v1031_v17  ;;  %v1039_v41 = vmul.f32 1.442695, %v1034_v13 }
 0x132   : > { %2146 = vpow2.f32 %v770_v5  ;;  %v764_v42 = vmul.f32 1.442695, %v760_v23  ;;  %v1037_v44 = vmul.f32 1.442695, %v1033_v24  ;;  %vm779_vm2 = vcmp.ge.f32.partialorder %v2579_v18, 0.0 }
 0x133   : > { %2148 = vpow2.f32 %v766_v21  ;;  %v768_v51 = vmul.f32 1.442695, %v762_v32  ;;  %vm1052_vm3 = vcmp.ge.f32.partialorder %v2581_v26, 0.0  ;;  %vm778_vm6 = vcmp.ge.f32.partialorder %v2585_v37, 0.0 }
 0x134   : > { %2150 = vpow2.f32 %v1043_v31  ;;  %vm1051_vm7 = vcmp.ge.f32.partialorder %v2587_v39, 0.0 }
 0x135   : > { %v2591_v47 = vpop.eup %2130  ;;  %2152 = vpow2.f32 %v1039_v41 }
 0x136   : > { %v2593_v49 = vpop.eup %2132  ;;  %v721_v52 = vmul.f32 1.0614054, %v2591_v47  ;;  %2154 = vpow2.f32 %v764_v42 }
 0x137   : > { %v994_v55 = vmul.f32 1.0614054, %v2593_v49  ;;  %v2597_v57 = vpop.eup %2134  ;;  %2156 = vpow2.f32 %v1037_v44 }
 0x138   : > { %v725_v56 = vadd.f32 -1.4531521, %v721_v52  ;;  %v720_v63 = vmul.f32 1.0614054, %v2597_v57  ;;  %v2601_v0 = vpop.eup %2136  ;;  %2158 = vpow2.f32 %v768_v51 }
 0x139   : > { %v998_v60 = vadd.f32 -1.4531521, %v994_v55  ;;  %v993_v8 = vmul.f32 1.0614054, %v2601_v0  ;;  %v2605_v12 = vpop.eup %2138  ;;  %v1041_v55 = vmul.f32 1.442695, %v1035_v35 }
 0x13a   : > { %v729_v62 = vmul.f32 %v2591_v47, %v725_v56  ;;  %v724_v11 = vadd.f32 -1.4531521, %v720_v63  ;;  %v723_v19 = vmul.f32 1.0614054, %v2605_v12  ;;  %v2609_v25 = vpop.eup %2140 }
 0x13b   : > { %v1002_v6 = vmul.f32 %v2593_v49, %v998_v60  ;;  %v997_v22 = vadd.f32 -1.4531521, %v993_v8  ;;  %v996_v33 = vmul.f32 1.0614054, %v2609_v25  ;;  %2160 = vpow2.f32 %v1041_v55 }
 0x13c   : > { %v733_v7 = vadd.f32 1.4214138, %v729_v62  ;;  %v728_v20 = vmul.f32 %v2597_v57, %v724_v11  ;;  %v727_v27 = vadd.f32 -1.4531521, %v723_v19 }
 0x13d   : > { %v1006_v16 = vadd.f32 1.4214138, %v1002_v6  ;;  %v1001_v29 = vmul.f32 %v2601_v0, %v997_v22  ;;  %v1000_v43 = vadd.f32 -1.4531521, %v996_v33  ;;  %v2618_v50 = vpop.eup %2142 }
 0x13e   : > { %v737_v28 = vmul.f32 %v2591_v47, %v733_v7  ;;  %v732_v30 = vadd.f32 1.4214138, %v728_v20  ;;  %v731_v36 = vmul.f32 %v2605_v12, %v727_v27  ;;  %v2621_v54 = vpop.eup %2144  ;;  %v722_v58 = vmul.f32 1.0614054, %v2618_v50 }
 0x13f   : > { %v1010_v34 = vmul.f32 %v2593_v49, %v1006_v16  ;;  %v1005_v38 = vadd.f32 1.4214138, %v1001_v29  ;;  %v1004_v52 = vmul.f32 %v2609_v25, %v1000_v43  ;;  %v995_v61 = vmul.f32 1.0614054, %v2621_v54  ;;  %v2147_v17 = vpop.eup %2146 }
 0x140   : > { %v736_v40 = vmul.f32 %v2597_v57, %v732_v30  ;;  %v735_v45 = vadd.f32 1.4214138, %v731_v36  ;;  %v741_v46 = vadd.f32 -0.28449672, %v737_v28  ;;  %v726_v1 = vadd.f32 -1.4531521, %v722_v58  ;;  %v2149_v33 = vpop.eup %2148 }
 0x141   : > { %v1009_v48 = vmul.f32 %v2601_v0, %v1005_v38  ;;  %v1014_v53 = vadd.f32 -0.28449672, %v1010_v34  ;;  %v1008_v60 = vadd.f32 1.4214138, %v1004_v52  ;;  %v999_v6 = vadd.f32 -1.4531521, %v995_v61  ;;  %v2151_v42 = vpop.eup %2150 }
 0x142   : > { %v739_v56 = vmul.f32 %v2605_v12, %v735_v45  ;;  %v740_v59 = vadd.f32 -0.28449672, %v736_v40  ;;  %v745_v4 = vmul.f32 %v2591_v47, %v741_v46  ;;  %v730_v11 = vmul.f32 %v2618_v50, %v726_v1  ;;  %v2153_v51 = vpop.eup %2152 }
 0x143   : > { %v1013_v62 = vadd.f32 -0.28449672, %v1009_v48  ;;  %v1012_v5 = vmul.f32 %v2609_v25, %v1008_v60  ;;  %v1018_v7 = vmul.f32 %v2593_v49, %v1014_v53  ;;  %v1003_v15 = vmul.f32 %v2621_v54, %v999_v6 }
 0x144   : > { %v743_v63 = vadd.f32 -0.28449672, %v739_v56  ;;  %v744_v13 = vmul.f32 %v2597_v57, %v740_v59  ;;  %v734_v22 = vadd.f32 1.4214138, %v730_v11  ;;  %v749_v20 = vadd.f32 0.2548296, %v745_v4 }
 0x145   : > { %v1016_v14 = vadd.f32 -0.28449672, %v1012_v5  ;;  %v1017_v16 = vmul.f32 %v2601_v0, %v1013_v62  ;;  %v1007_v23 = vadd.f32 1.4214138, %v1003_v15  ;;  %v1022_v24 = vadd.f32 0.2548296, %v1018_v7 }
 0x146   : > { %v747_v8 = vmul.f32 %v2605_v12, %v743_v63  ;;  %v738_v28 = vmul.f32 %v2618_v50, %v734_v22  ;;  %v748_v29 = vadd.f32 0.2548296, %v744_v13  ;;  %v753_v36 = vmul.f32 %v2591_v47, %v749_v20 }
 0x147   : > { %v1020_v21 = vmul.f32 %v2609_v25, %v1016_v14  ;;  %v1011_v31 = vmul.f32 %v2621_v54, %v1007_v23  ;;  %v1021_v32 = vadd.f32 0.2548296, %v1017_v16  ;;  %v1026_v41 = vmul.f32 %v2593_v49, %v1022_v24  ;;  %v2155_v49 = vpop.eup %2154 }
 0x148   : > { %v751_v19 = vadd.f32 0.2548296, %v747_v8  ;;  %v742_v35 = vadd.f32 -0.28449672, %v738_v28  ;;  %v752_v44 = vmul.f32 %v2597_v57, %v748_v29  ;;  %v791_v45 = vmul.f32 0.5, %v2579_v18  ;;  %v2157_v60 = vpop.eup %2156 }
 0x149   : > { %v1024_v30 = vadd.f32 0.2548296, %v1020_v21  ;;  %v1015_v40 = vadd.f32 -0.28449672, %v1011_v31  ;;  %v1025_v47 = vmul.f32 %v2601_v0, %v1021_v32  ;;  %v773_v53 = vmul.f32 %v2149_v33, %v753_v36  ;;  %v2159_v62 = vpop.eup %2158  ;;  %v1074_v31 = vld [vmem:[%s2793_s6 + $0x8] sm:$0xff]  ;;  %v1079_v32 = vld [vmem:[%s2794_s7 + $0x10] sm:$0xff] }
 0x14a   : > { %v755_v27 = vmul.f32 %v2605_v12, %v751_v19  ;;  %v746_v43 = vmul.f32 %v2618_v50, %v742_v35  ;;  %v1046_v59 = vmul.f32 %v2153_v51, %v1026_v41  ;;  %v1064_v18 = vmul.f32 0.5, %v2581_v26  ;;  %v2161_v4 = vpop.eup %2160  ;;  %v1075_v33 = vld [vmem:[%s2793_s6 + $0x10] sm:$0xff]  ;;  %v1076_v35 = vld [vmem:[%s2793_s6 + $0x18] sm:$0xff]  ;;  %v1403_v51 = vpop.permute.xlu0 %1402 }
 0x14b   : > { %v1028_v38 = vmul.f32 %v2609_v25, %v1024_v30  ;;  %v1019_v48 = vmul.f32 %v2621_v54, %v1015_v40  ;;  %v772_v61 = vmul.f32 %v2155_v49, %v752_v44  ;;  %v1045_v1 = vmul.f32 %v2157_v60, %v1025_v47  ;;  %v1080_v36 = vld [vmem:[%s2794_s7 + $0x18] sm:$0xff]  ;;  %v1276_v40 = vld [vmem:[%s2795_s8] sm:$0xff] }
 0x14c   : > { %v775_v34 = vmul.f32 %v2147_v17, %v755_v27  ;;  %v750_v52 = vadd.f32 0.2548296, %v746_v43  ;;  %v781_v7 = vsub.f32 2.0, %v773_v53  ;;  %v1054_v26 = vsub.f32 2.0, %v1046_v59  ;;  %v1279_v43 = vld [vmem:[%s2795_s8 + $0x18] sm:$0xff]  ;;  %v1509_v44 = vld [vmem:[%s2797_s10] sm:$0xff] }
 0x14d   : > { %v1048_v46 = vmul.f32 %v2151_v42, %v1028_v38  ;;  %v1023_v58 = vadd.f32 0.2548296, %v1019_v48  ;;  %v780_v13 = vsub.f32 2.0, %v772_v61  ;;  %v1053_v15 = vsub.f32 2.0, %v1045_v1  ;;  %v1277_v42 = vld [vmem:[%s2795_s8 + $0x8] sm:$0xff] }
 0x14e   : > { %v783_v12 = vsub.f32 2.0, %v775_v34  ;;  %v754_v57 = vmul.f32 %v2618_v50, %v750_v52  ;;  %v789_v50 = vmul.f32 0.5, %v2567_v2  ;;  %v1063_v16 = vmul.f32 0.5, %v2587_v39  ;;  %v1398_v52 = vpop.permute.xlu1 %1397  ;;  %v1393_v60 = vpop.permute.xlu0 %1392 }
 0x14f   : > { %v1056_v55 = vsub.f32 2.0, %v1048_v46  ;;  %v1027_v63 = vmul.f32 %v2621_v54, %v1023_v58  ;;  %v790_v54 = vmul.f32 0.5, %v2585_v37  ;;  %v785_v19 = vsel %vm777_vm4, %v781_v7, %v773_v53 }
 0x150   : > { %v787_v25 = vsel %vm779_vm2, %v783_v12, %v775_v34  ;;  %v774_v6 = vmul.f32 %v2159_v62, %v754_v57  ;;  %v1058_v21 = vsel %vm1050_vm5, %v1054_v26, %v1046_v59  ;;  %v1062_v37 = vmul.f32 0.5, %v2569_v3  ;;  %v1278_v12 = vld [vmem:[%s2795_s8 + $0x10] sm:$0xff] }
 0x151   : > { %v2647_v56 = vmul.f32 %v791_v45, %v787_v25  ;;  %v1060_v0 = vsel %vm1052_vm3, %v1056_v55, %v1048_v46  ;;  %v1047_v8 = vmul.f32 %v2161_v4, %v1027_v63  ;;  %v784_v24 = vsel %vm776_vm8, %v780_v13, %v772_v61 }
 0x152   : > { %v1068_v5 = vmul.f32 %v1064_v18, %v1060_v0  ;;  %v782_v11 = vsub.f32 2.0, %v774_v6  ;;  %v788_v27 = vmul.f32 0.5, %v2573_v9  ;;  %v793_v39 = vmul.f32 %v789_v50, %v785_v19  ;;  %v1078_v9 = vld [vmem:[%s2794_s7 + $0x8] sm:$0xff]  ;;  %v1388_v63 = vpop.permute.xlu1 %1387 }
 0x153   : > { %2040 = vmatprep.subr.mxu1 %v2647_v56  ;;  %v1055_v14 = vsub.f32 2.0, %v1047_v8  ;;  %v1057_v28 = vsel %vm1049_vm9, %v1053_v15, %v1045_v1  ;;  %v1061_v2 = vmul.f32 0.5, %v2575_v10  ;;  %v1066_v29 = vmul.f32 %v1062_v37, %v1058_v21 }
 0x154   : > { %2041 = vmatpush3.msra.mxu1 %v2647_v56  ;;  %2026 = vmatprep.subr.mxu0 %v1068_v5  ;;  %v786_v17 = vsel %vm778_vm6, %v782_v11, %v774_v6  ;;  %v792_v30 = vmul.f32 %v788_v27, %v784_v24  ;;  %v1072_v10 = vmul.f32 %v1068_v5, %v2647_v56 }
 0x155   : > { %2027 = vmatpush3.msra.mxu0 %v1068_v5  ;;  %v1059_v22 = vsel %vm1051_vm7, %v1055_v14, %v1047_v8  ;;  %v794_v20 = vmul.f32 %v790_v54, %v786_v17  ;;  %v1065_v3 = vmul.f32 %v1061_v2, %v1057_v28  ;;  %v1070_v38 = vmul.f32 %v1066_v29, %v793_v39 }
 0x156   : > { %v1067_v23 = vmul.f32 %v1063_v16, %v1059_v22 }
 0x157   : > { %2042 = vmatprep.subr.mxu1 %v794_v20  ;;  %v1069_v41 = vmul.f32 %v1065_v3, %v792_v30 }
 0x158   : > { %2028 = vmatprep.subr.mxu0 %v1067_v23  ;;  %2043 = vmatpush3.msra.mxu1 %v794_v20  ;;  %v1071_v34 = vmul.f32 %v1067_v23, %v794_v20 }
 0x159   : > { %2029 = vmatpush3.msra.mxu0 %v1067_v23  ;;  %2044 = vmatprep.subr.mxu1 %v793_v39 }
 0x15a   : > { %2030 = vmatprep.subr.mxu0 %v1066_v29  ;;  %2045 = vmatpush3.msra.mxu1 %v793_v39 }
 0x15b   : > { %2031 = vmatpush3.msra.mxu0 %v1066_v29  ;;  %2046 = vmatprep.subr.mxu1 %v792_v30 }
 0x15c   : > { %2032 = vmatprep.subr.mxu0 %v1065_v3  ;;  %2047 = vmatpush3.msra.mxu1 %v792_v30 }
 0x15d   : > { %2033 = vmatpush3.msra.mxu0 %v1065_v3  ;;  %2049 = vmatmul.mubr.msk.f32.vlgmr.msra.gmra.mxu1 %vm1081_vm1, %v1074_v31 }
 0x15e   : > { %2035 = vmatmul.mubr.msk.f32.vlgmr.msra.gmra.mxu0 %vm1081_vm1, %v1078_v9  ;;  %2054 = vmatprep.subr.mxu0 %v1072_v10 }
 0x15f   : > { %2055 = vmatpush3.msra.mxu0 %v1072_v10  ;;  %2037 = vmatprep.mubr.msk.f32.mxu0 %vm1081_vm1, %v1079_v32 }
 0x160   : > { %2056 = vmatprep.subr.mxu0 %v1071_v34  ;;  %2051 = vmatprep.mubr.msk.f32.mxu1 %vm1081_vm1, %v1075_v33 }
 0x161   : > { %2057 = vmatpush3.msra.mxu0 %v1071_v34  ;;  %2052 = vmatmul.mubr.msk.f32.gmra.mxu1 %vm1081_vm1, %v1076_v35 }
 0x162   : > { %2038 = vmatmul.mubr.msk.f32.gmra.mxu0 %vm1081_vm1, %v1080_v36  ;;  %2058 = vmatprep.subr.mxu0 %v1070_v38 }
 0x163   : > { %2059 = vmatpush3.msra.mxu0 %v1070_v38  ;;  %2062 = vmatprep.mubr.msk.f32.mxu0 %vm1081_vm1, %v1276_v40 }
 0x164   : > { %2060 = vmatprep.subr.mxu0 %v1069_v41  ;;  %2076 = vmatprep.mubr.msk.f32.mxu1 %vm1081_vm1, %v1509_v44 }
 0x165   : > { %2061 = vmatpush3.msra.mxu0 %v1069_v41 }
 0x166   : > { %2063 = vmatmul.mubr.msk.f32.vlgmr.msra.gmra.mxu0 %vm1081_vm1, %v1277_v42 }
 0x167   : > { %2065 = vmatprep.mubr.msk.f32.mxu0 %vm1081_vm1, %v1278_v12 }
 0x16a   : > { %2066 = vmatmul.mubr.msk.f32.gmra.mxu0 %vm1081_vm1, %v1279_v43 }
 0x21d   : > { %v2050_v45 = vpop.f32.mrf.mxu1 }
 0x21e   : > { %v2036_v46 = vpop.f32.mrf.mxu0 }
 0x21f   : > { %v1257_v47 = vpop.f32.mrf.mxu1  ;;  %v1263_v49 = vadd.f32 %v2050_v45, %v2036_v46 }
 0x220   : > { %v1160_v48 = vpop.f32.mrf.mxu0 }
 0x221   : > { %v2053_v55 = vpop.f32.mrf.mxu1  ;;  %v1258_v58 = vadd.f32 %v1257_v47, %v1160_v48 }
 0x222   : > { %v2039_v25 = vpop.f32.mrf.mxu0 }
 0x223   : > { %v1273_v57 = vadd.f32 %v2053_v55, %v2039_v25  ;;  %v1267_v61 = vpop.f32.mrf.mxu1 }
 0x224   : > { %v1170_v53 = vpop.f32.mrf.mxu0 }
 0x225   : > { %v1268_v7 = vadd.f32 %v1267_v61, %v1170_v53 }
 0x226   : > { %v2064_v56 = vpop.f32.mrf.mxu0 }
 0x227   : > { %v1378_v59 = vadd.f32 %v2064_v56, %v1263_v49 }
 0x228   : > { %v1358_v18 = vpop.f32.mrf.mxu0 }
 0x229   : > { %v2716_v62 = vadd.f32 %v1393_v60, %v1378_v59  ;;  %v1377_v0 = vadd.f32 %v1358_v18, %v1258_v58 }
 0x22a   : > { %v2067_v1 = vpop.f32.mrf.mxu0 }
 0x22b   : > { %v1410_v4 = vand.u32 2147483647, %v2716_v62  ;;  %v2719_v5 = vadd.f32 %v1388_v63, %v1377_v0  ;;  %v1380_v6 = vadd.f32 %v2067_v1, %v1273_v57  ;;  %vm1490_vm11 = vcmp.ge.f32.partialorder %v2716_v62, 0.0 }
 0x22c   : > { %v1368_v8 = vpop.f32.mrf.mxu0 }
 0x22d   : > { %v1414_v26 = vmul.f32 0.70710677, %v1410_v4  ;;  %v1409_v50 = vand.u32 2147483647, %v2719_v5  ;;  %v2722_v11 = vadd.f32 %v1403_v51, %v1380_v6  ;;  %v1379_v13 = vadd.f32 %v1368_v8, %v1268_v7 }
 0x22e   : > { %vm1489_vm13 = vcmp.ge.f32.partialorder %v2719_v5, 0.0 }
 0x22f   : > { %v1418_v54 = vmul.f32 0.3275911, %v1414_v26  ;;  %v1413_v14 = vmul.f32 0.70710677, %v1409_v50  ;;  %v1412_v15 = vand.u32 2147483647, %v2722_v11  ;;  %v2725_v16 = vadd.f32 %v1398_v52, %v1379_v13 }
 0x230   : > { %v1470_v28 = vmul.f32 %v1414_v26, %v1414_v26  ;;  %vm1492_vm10 = vcmp.ge.f32.partialorder %v2722_v11, 0.0 }
 0x231   : > { %v1422_v17 = vadd.f32 1.0, %v1418_v54  ;;  %v1417_v19 = vmul.f32 0.3275911, %v1413_v14  ;;  %v1416_v22 = vmul.f32 0.70710677, %v1412_v15  ;;  %v1469_v29 = vmul.f32 %v1413_v14, %v1413_v14 }
 0x232   : > { %v1411_v20 = vand.u32 2147483647, %v2725_v16  ;;  %v1474_v3 = vsub.f32 0.0, %v1470_v28  ;;  %v1504_v28 = vmul.f32 0.5, %v2722_v11  ;;  %vm1491_vm12 = vcmp.ge.f32.partialorder %v2725_v16, 0.0 }
 0x233   : > { %2162 = vrcp.f32 %v1422_v17  ;;  %v1421_v21 = vadd.f32 1.0, %v1417_v19  ;;  %v1420_v37 = vmul.f32 0.3275911, %v1416_v22  ;;  %v1472_v2 = vmul.f32 %v1416_v22, %v1416_v22 }
 0x234   : > { %v1415_v23 = vmul.f32 0.70710677, %v1411_v20  ;;  %v1473_v33 = vsub.f32 0.0, %v1469_v29  ;;  %v1479_v38 = vmul.f32 1.442695, %v1474_v3  ;;  %v1502_v11 = vmul.f32 0.5, %v2716_v62  ;;  %v1521_v62 = vpop.permute.xlu0 %1520 }
 0x235   : > { %2164 = vrcp.f32 %v1421_v21  ;;  %v1424_v24 = vadd.f32 1.0, %v1420_v37  ;;  %v1476_v10 = vsub.f32 0.0, %v1472_v2 }
 0x236   : > { %v1419_v27 = vmul.f32 0.3275911, %v1415_v23  ;;  %v1471_v31 = vmul.f32 %v1415_v23, %v1415_v23  ;;  %v1477_v44 = vmul.f32 1.442695, %v1473_v33 }
 0x237   : > { %2166 = vrcp.f32 %v1424_v24  ;;  %v1483_v42 = vmul.f32 1.442695, %v1476_v10  ;;  %v1503_v10 = vmul.f32 0.5, %v2725_v16  ;;  %v1510_v16 = vld [vmem:[%s2797_s10 + $0x8] sm:$0xff] }
 0x238   : > { %v1423_v39 = vadd.f32 1.0, %v1419_v27  ;;  %v1475_v40 = vsub.f32 0.0, %v1471_v31 }
 0x23a   : > { %2168 = vrcp.f32 %v1423_v39  ;;  %v1481_v51 = vmul.f32 1.442695, %v1475_v40 }
 0x23b   : > { %2170 = vpow2.f32 %v1479_v38  ;;  %v1501_v38 = vmul.f32 0.5, %v2719_v5 }
 0x23c   : > { %2172 = vpow2.f32 %v1483_v42 }
 0x23d   : > { %2174 = vpow2.f32 %v1477_v44 }
 0x23e   : > { %2176 = vpow2.f32 %v1481_v51 }
 0x240   : > { %v2163_v30 = vpop.eup %2162 }
 0x241   : > { %v1434_v9 = vmul.f32 1.0614054, %v2163_v30 }
 0x242   : > { %v2165_v32 = vpop.eup %2164 }
 0x243   : > { %v1438_v34 = vadd.f32 -1.4531521, %v1434_v9  ;;  %v1433_v35 = vmul.f32 1.0614054, %v2165_v32 }
 0x244   : > { %v2167_v36 = vpop.eup %2166 }
 0x245   : > { %v1442_v41 = vmul.f32 %v2163_v30, %v1438_v34  ;;  %v1436_v12 = vmul.f32 1.0614054, %v2167_v36  ;;  %v1437_v43 = vadd.f32 -1.4531521, %v1433_v35 }
 0x247   : > { %v1446_v45 = vadd.f32 1.4214138, %v1442_v41  ;;  %v2169_v46 = vpop.eup %2168  ;;  %v1440_v48 = vadd.f32 -1.4531521, %v1436_v12  ;;  %v1441_v47 = vmul.f32 %v2165_v32, %v1437_v43  ;;  %v2249_v41 = vmov 0.0   ;;  %v1516_v12 = vpop.permute.xlu1 %1515 }
 0x248   : > { %v1435_v25 = vmul.f32 1.0614054, %v2169_v46  ;;  %v2171_v15 = vpop.eup %2170 }
 0x249   : > { %v1450_v52 = vmul.f32 %v2163_v30, %v1446_v45  ;;  %v1444_v53 = vmul.f32 %v2167_v36, %v1440_v48  ;;  %v1445_v49 = vadd.f32 1.4214138, %v1441_v47  ;;  %v2173_v19 = vpop.eup %2172 }
 0x24a   : > { %v1439_v55 = vadd.f32 -1.4531521, %v1435_v25  ;;  %v2175_v21 = vpop.eup %2174 }
 0x24b   : > { %v1454_v56 = vadd.f32 -0.28449672, %v1450_v52  ;;  %v1448_v58 = vadd.f32 1.4214138, %v1444_v53  ;;  %v1449_v59 = vmul.f32 %v2165_v32, %v1445_v49  ;;  %v2177_v27 = vpop.eup %2176 }
 0x24c   : > { %v1443_v60 = vmul.f32 %v2169_v46, %v1439_v55 }
 0x24d   : > { %v1458_v18 = vmul.f32 %v2163_v30, %v1454_v56  ;;  %v1452_v57 = vmul.f32 %v2167_v36, %v1448_v58  ;;  %v1453_v61 = vadd.f32 -0.28449672, %v1449_v59 }
 0x24e   : > { %v1447_v0 = vadd.f32 1.4214138, %v1443_v60 }
 0x24f   : > { %v1462_v63 = vadd.f32 0.2548296, %v1458_v18  ;;  %v1456_v1 = vadd.f32 -0.28449672, %v1452_v57  ;;  %v1457_v4 = vmul.f32 %v2165_v32, %v1453_v61 }
 0x250   : > { %v1451_v6 = vmul.f32 %v2169_v46, %v1447_v0 }
 0x251   : > { %v1460_v7 = vmul.f32 %v2167_v36, %v1456_v1  ;;  %v1461_v8 = vadd.f32 0.2548296, %v1457_v4  ;;  %v1466_v50 = vmul.f32 %v2163_v30, %v1462_v63 }
 0x252   : > { %v1455_v26 = vadd.f32 -0.28449672, %v1451_v6 }
 0x253   : > { %v1464_v13 = vadd.f32 0.2548296, %v1460_v7  ;;  %v1465_v14 = vmul.f32 %v2165_v32, %v1461_v8  ;;  %v1486_v20 = vmul.f32 %v2171_v15, %v1466_v50 }
 0x254   : > { %v1459_v54 = vmul.f32 %v2169_v46, %v1455_v26 }
 0x255   : > { %v1468_v17 = vmul.f32 %v2167_v36, %v1464_v13  ;;  %v1485_v24 = vmul.f32 %v2175_v21, %v1465_v14  ;;  %v1494_v29 = vsub.f32 2.0, %v1486_v20 }
 0x256   : > { %v1463_v22 = vadd.f32 0.2548296, %v1459_v54 }
 0x257   : > { %v1488_v37 = vmul.f32 %v2173_v19, %v1468_v17  ;;  %v1493_v9 = vsub.f32 2.0, %v1485_v24  ;;  %v1498_v33 = vsel %vm1490_vm11, %v1494_v29, %v1486_v20 }
 0x258   : > { %v1467_v23 = vmul.f32 %v2169_v46, %v1463_v22  ;;  %v1506_v36 = vmul.f32 %v1502_v11, %v1498_v33 }
 0x259   : > { %v1496_v39 = vsub.f32 2.0, %v1488_v37  ;;  %v1497_v35 = vsel %vm1489_vm13, %v1493_v9, %v1485_v24  ;;  %v1654_v9 = vld [vmem:[%s2799_s12] sm:$0x1] }
 0x25a   : > { %v1487_v2 = vmul.f32 %v2177_v27, %v1467_v23  ;;  %v1505_v40 = vmul.f32 %v1501_v38, %v1497_v35 }
 0x25b   : > { %v1500_v30 = vsel %vm1492_vm10, %v1496_v39, %v1488_v37 }
 0x25c   : > { %v1508_v3 = vmul.f32 %v1504_v28, %v1500_v30  ;;  %v1495_v31 = vsub.f32 2.0, %v1487_v2 }
 0x25e   : > { %2068 = vmatprep.subr.mxu1 %v1508_v3  ;;  %v1499_v32 = vsel %vm1491_vm12, %v1495_v31, %v1487_v2 }
 0x25f   : > { %2069 = vmatpush3.msra.mxu1 %v1508_v3  ;;  %v1507_v34 = vmul.f32 %v1503_v10, %v1499_v32  ;;  %v1656_v10 = vstv %s1655_s29 }
 0x261   : > { %2070 = vmatprep.subr.mxu1 %v1507_v34 }
 0x262   : > { %2071 = vmatpush3.msra.mxu1 %v1507_v34 }
 0x263   : > { %2072 = vmatprep.subr.mxu1 %v1506_v36 }
 0x264   : > { %2073 = vmatpush3.msra.mxu1 %v1506_v36 }
 0x265   : > { %2074 = vmatprep.subr.mxu1 %v1505_v40 }
 0x266   : > { %2075 = vmatpush3.msra.mxu1 %v1505_v40 }
 0x267   : > { %2077 = vmatmul.mubr.msk.f32.vlgmr.msra.gmra.mxu1 %vm1081_vm1, %v1510_v16  ;;  %2079 = vmatprep.subr.mxu1 %v2249_v41 }
 0x268   : > { %2083 = vmatprep.mubr.msk.f32.mxu1 %vm2250_vm14, %v2249_v41 }
 0x327   : > { %v2078_v5 = vpop.f32.mrf.mxu1 }
 0x328   : > { %v1601_v42 = vadd.f32 %v2078_v5, %v1521_v62 }
 0x329   : > { %v1595_v43 = vpop.f32.mrf.mxu1 }
 0x32a   : > { %v1605_v44 = vand.u32 2147483647, %v1601_v42  ;;  %v1596_v45 = vadd.f32 %v1595_v43, %v1516_v12  ;;  %vm1645_vm15 = vcmp.ge.f32.partialorder %v1601_v42, 0.0  ;;  %v1651_v27 = vmul.f32 0.5, %v1601_v42 }
 0x32c   : > { %v1607_v46 = vmul.f32 0.70710677, %v1605_v44  ;;  %v1604_v48 = vand.u32 2147483647, %v1596_v45  ;;  %vm1644_vm1 = vcmp.ge.f32.partialorder %v1596_v45, 0.0  ;;  %v1650_v30 = vmul.f32 0.5, %v1596_v45 }
 0x32e   : > { %v1609_v47 = vmul.f32 0.3275911, %v1607_v46  ;;  %v1606_v51 = vmul.f32 0.70710677, %v1604_v48  ;;  %v1635_v49 = vmul.f32 %v1607_v46, %v1607_v46 }
 0x330   : > { %v1611_v25 = vadd.f32 1.0, %v1609_v47  ;;  %v1608_v52 = vmul.f32 0.3275911, %v1606_v51  ;;  %v1634_v55 = vmul.f32 %v1606_v51, %v1606_v51  ;;  %v1637_v56 = vsub.f32 0.0, %v1635_v49 }
 0x332   : > { %2178 = vrcp.f32 %v1611_v25  ;;  %v1610_v53 = vadd.f32 1.0, %v1608_v52  ;;  %v1636_v59 = vsub.f32 0.0, %v1634_v55  ;;  %v1640_v18 = vmul.f32 1.442695, %v1637_v56 }
 0x334   : > { %2180 = vrcp.f32 %v1610_v53  ;;  %v1638_v63 = vmul.f32 1.442695, %v1636_v59 }
 0x335   : > { %2182 = vpow2.f32 %v1640_v18 }
 0x336   : > { %2184 = vpow2.f32 %v1638_v63 }
 0x33f   : > { %v2179_v58 = vpop.eup %2178 }
 0x340   : > { %v1617_v60 = vmul.f32 1.0614054, %v2179_v58 }
 0x341   : > { %v2181_v57 = vpop.eup %2180 }
 0x342   : > { %v1619_v61 = vadd.f32 -1.4531521, %v1617_v60  ;;  %v1616_v0 = vmul.f32 1.0614054, %v2181_v57  ;;  %v2183_v22 = vpop.eup %2182 }
 0x343   : > { %v2185_v23 = vpop.eup %2184 }
 0x344   : > { %v1621_v1 = vmul.f32 %v2179_v58, %v1619_v61  ;;  %v1618_v4 = vadd.f32 -1.4531521, %v1616_v0 }
 0x346   : > { %v1623_v6 = vadd.f32 1.4214138, %v1621_v1  ;;  %v1620_v7 = vmul.f32 %v2181_v57, %v1618_v4 }
 0x348   : > { %v1625_v8 = vmul.f32 %v2179_v58, %v1623_v6  ;;  %v1622_v26 = vadd.f32 1.4214138, %v1620_v7 }
 0x34a   : > { %v1627_v50 = vadd.f32 -0.28449672, %v1625_v8  ;;  %v1624_v13 = vmul.f32 %v2181_v57, %v1622_v26 }
 0x34c   : > { %v1629_v54 = vmul.f32 %v2179_v58, %v1627_v50  ;;  %v1626_v14 = vadd.f32 -0.28449672, %v1624_v13 }
 0x34e   : > { %v1631_v15 = vadd.f32 0.2548296, %v1629_v54  ;;  %v1628_v17 = vmul.f32 %v2181_v57, %v1626_v14 }
 0x350   : > { %v1633_v19 = vmul.f32 %v2179_v58, %v1631_v15  ;;  %v1630_v20 = vadd.f32 0.2548296, %v1628_v17 }
 0x352   : > { %v1643_v21 = vmul.f32 %v2183_v22, %v1633_v19  ;;  %v1632_v37 = vmul.f32 %v2181_v57, %v1630_v20 }
 0x354   : > { %v1647_v24 = vsub.f32 2.0, %v1643_v21  ;;  %v1642_v39 = vmul.f32 %v2185_v23, %v1632_v37 }
 0x356   : > { %v1649_v28 = vsel %vm1645_vm15, %v1647_v24, %v1643_v21  ;;  %v1646_v29 = vsub.f32 2.0, %v1642_v39 }
 0x357   : > { %v1653_v2 = vmul.f32 %v1651_v27, %v1649_v28 }
 0x358   : > { %v1648_v3 = vsel %vm1644_vm1, %v1646_v29, %v1642_v39 }
 0x359   : > { %2080 = vmatpush3.msra.mxu1 %v1653_v2  ;;  %v1652_v31 = vmul.f32 %v1650_v30, %v1648_v3 }
 0x35a   : > { %2081 = vmatprep.subr.mxu1 %v2249_v41 }
 0x35b   : > { %2082 = vmatpush3.msra.mxu1 %v1652_v31 }
 0x35c   : > { %2084 = vmatmul.mubr.msk.f32.vlgmr.msra.gmra.mxu1 %vm550_vm0, %v1654_v9 }
 0x41c   : > { %v1726_v32 = vpop.f32.mrf.mxu1 }
 0x41d   : > { %v1727_v33 = vadd.f32 %v1726_v32, %v1656_v10 }
 0x41e   : > { %v2085_v34 = vpop.f32.mrf.mxu1 }
 0x41f   : > { %1730 = vst [vmem:[%s477_s13] sm:$0x1] %v1727_v33 }
 0x420   : > { %2199 = shalt.err (!%p2196_p3)
}
 0x421   : > { %s2200_s26 = scalar_lea.hbm %s2752_s21, 16  ;;  %s2204_s13 = scalar_lea.hbm %s2801_s14, 32 }
 0x422   : > { %p2201_p4 = scmp.ne.s32.totalorder %s2752_s21, %s2200_s26  ;;  %p2205_p9 = scmp.lt.s32.totalorder %s2752_s21, %s2801_s14 }
 0x423   : > { %p2206_p10 = scmp.lt.s32.totalorder %s2204_s13, %s2200_s26 }
 0x424   : > { %p2202_p7 = pnand %p2201_p4, %p2365_p5 }
 0x425   : > { %p2207_p11 = por %p2206_p10, %p2205_p9 }
 0x426   : > { %p2203_p8 = pneg %p2202_p7 }
 0x428   : > { %p2208_p12 = pnand %p2207_p11, %p2203_p8 }
 0x42a   : > { %2211 = shalt.err (!%p2208_p12)
}
 0x42b   : > { %2086 = dma.vmem_to_hbm [thread:$0]  (%p2365_p5), %s1745_s19, 16, %s2752_s21, %s1732_s22  }
 0x42c PF: > { %p2092_p13 = scmp.ge.s32.totalorder %s2246_s18, 2  ;;  %s1756_s28 = sand.u32 1, %s2234_s15  }
 0x42d   : > { %s1757_s20 = scalar_lea.sflag [#allocation4], %s1756_s28 }
 0x42e   : > { %p2089_p0 = pnand %p2092_p13, %p2369_p6 }
 0x430   : > { %p2090_p1 = pneg %p2089_p0 }
 0x432   : > { %2229 = dma.done.wait (%p2090_p1), %s1757_s20, 16  }
 0x433   : > { %2231 = vsyncadd (%p2090_p1), %s1757_s20, 4294967280  ;;  %s2813_s18 = sld [smem:[#allocation7_spill]]  ;;  %s2816_s15 = smov %s2238_s16 }
 0x434   : > { %s2814_s25 = sld [smem:[#allocation6_spill]] }
 0x435   : > { %s2815_s17 = sld [smem:[#allocation8_spill]] }
 0x439   : > { %p25_p2 = scmp.ge.s32.totalorder %s2813_s18, 4  }
 0x43a   : > { %s2817_s16 = smov %s2814_s25 }
 0x43b   :  { %27 = sbr.rel (!%p25_p2) target bundleno = 5 (0x5), region = 114 }
 0x440   :  { %1761 = vsyncpa [#allocation4], 1 }
 0x441   :  { %1763 = vsyncpa [#allocation4 + $0x1], 1 }

</bundles_post_ra>
